<compile_context>
chip_gen: v7x
topology: tpu7x:2x2x1
jax: 0.10.0
libtpu: 0.0.40
codegen_flags: <defaults>
</compile_context>

<pallas_src>
import functools

import jax
import jax.numpy as jnp
from jax.experimental import pallas as pl
from jax.experimental.pallas import tpu as pltpu


# ----------------------------------------------------------------------------
# Fused forward kernel (one grid step == one batch sample)
# ----------------------------------------------------------------------------
def _fused_kernel(cols_ref, patches_ref, pos_ref,
                  conv_w_ref, conv_b_ref,
                  cnn_fc_w_ref, cnn_fc_b_ref,
                  embed_w_ref, embed_b_ref,
                  wqkv_ref, wo_ref,
                  vit_out_w_ref, vit_out_b_ref,
                  fcw_cnn_ref, fcw_vit_ref, fc_b_ref,
                  out_ref, *, d, inv_hw, inv_np):
    f32 = jnp.float32
    bf16 = jnp.bfloat16

    # ---------------- CNN branch (this sample) ----------------
    # conv as im2col matmul: [HW, C*9] @ [C*9, 16] -> [HW, 16]
    conv = jnp.dot(cols_ref[...], conv_w_ref[...], preferred_element_type=f32)
    conv = jnp.maximum(conv + conv_b_ref[...], 0.0)            # ReLU, f32
    # global average pool fused in-kernel (never leaves VMEM)
    pooled = jnp.sum(conv, axis=0, keepdims=True) * inv_hw     # [1, 16]
    cnn_feat = jnp.dot(pooled.astype(bf16), cnn_fc_w_ref[...],
                       preferred_element_type=f32) + cnn_fc_b_ref[...]  # [1,128]

    # ---------------- ViT branch (this sample) ----------------
    # patch embedding + positional embedding (f32 epilogue)
    emb = (jnp.dot(patches_ref[...], embed_w_ref[...],
                   preferred_element_type=f32)
           + embed_b_ref[...] + pos_ref[...])                  # [Np, D] f32
    emb_bf = emb.astype(bf16)

    # fused QKV projection: one weight-stationary matmul [Np,D] @ [D,3D]
    qkv = jnp.dot(emb_bf, wqkv_ref[...], preferred_element_type=f32)
    q = qkv[:, 0:d]
    k = qkv[:, d:2 * d]
    v = qkv[:, 2 * d:3 * d]

    scale = 1.0 / (float(d) ** 0.5)
    # scores: q @ k^T (contract last dims)  -> [Np, Np], f32
    s = jax.lax.dot_general(q.astype(bf16), k.astype(bf16),
                            (((1,), (1,)), ((), ())),
                            preferred_element_type=f32) * scale
    # numerically-stable softmax (f32 elementwise; EUP reciprocal)
    s_max = jnp.max(s, axis=-1, keepdims=True)
    p = jnp.exp(s - s_max)
    p = p * pl.reciprocal(jnp.sum(p, axis=-1, keepdims=True), approx=True)

    ctx = jnp.dot(p.astype(bf16), v.astype(bf16),
                  preferred_element_type=f32)                  # [Np, D]
    y = jnp.dot(ctx.astype(bf16), wo_ref[...],
                preferred_element_type=f32) + emb              # residual, f32
    # mean-pool over patches, fused in-kernel
    pooled_tok = jnp.sum(y, axis=0, keepdims=True) * inv_np    # [1, D]
    vit_feat = jnp.dot(pooled_tok.astype(bf16), vit_out_w_ref[...],
                       preferred_element_type=f32) + vit_out_b_ref[...]  # [1,768]

    # ---------------- Fusion head ----------------
    # concat([cnn, vit]) @ fc_w  ==  cnn @ fc_w[:128] + vit @ fc_w[128:]
    out = (jnp.dot(cnn_feat.astype(bf16), fcw_cnn_ref[...],
                   preferred_element_type=f32)
           + jnp.dot(vit_feat.astype(bf16), fcw_vit_ref[...],
                     preferred_element_type=f32)
           + fc_b_ref[...])                                    # [1, 512]
    out_ref[...] = out.reshape(out_ref.shape).astype(out_ref.dtype)


# ----------------------------------------------------------------------------
# Plain-JAX layout plumbing (one-shot, tiny; feeds the single fused kernel)
# ----------------------------------------------------------------------------
def im2col_3x3_pad1(x):
    """x: [B, C, H, W] -> [B*H*W, C*9] (feature order: c-major, then (kh,kw))."""
    B, C, H, W = x.shape
    xp = jnp.pad(x, ((0, 0), (0, 0), (1, 1), (1, 1)))
    cols = [xp[:, :, i:i + H, j:j + W] for i in range(3) for j in range(3)]
    patches = jnp.stack(cols, axis=-1)            # [B, C, H, W, 9]
    patches = patches.transpose(0, 2, 3, 1, 4)    # [B, H, W, C, 9]
    return patches.reshape(B * H * W, C * 9)


def patchify(x, p):
    """x: [B, C, H, W] -> [B, (H/p)*(W/p), C*p*p]."""
    B, C, H, W = x.shape
    x = x.reshape(B, C, H // p, p, W // p, p)
    x = x.transpose(0, 2, 4, 1, 3, 5)
    return x.reshape(B, (H // p) * (W // p), C * p * p)


# ----------------------------------------------------------------------------
# Parameters (deterministic synthetic init; matmul weights stored in bf16)
# ----------------------------------------------------------------------------
def init_params(key):
    ks = jax.random.split(key, 16)

    def lin(k, fan_in, fan_out):
        w = jax.random.normal(k, (fan_in, fan_out), jnp.float32) * (fan_in ** -0.5)
        return w.astype(jnp.bfloat16)             # weights stored as [in, out]

    def bias(k, n):
        return 0.01 * jax.random.normal(k, (1, n), jnp.float32)

    D = 192
    params = {}
    # CNN branch
    params["conv_w"] = lin(ks[0], 3 * 3 * 3, 16)            # [27, 16]
    params["conv_b"] = bias(ks[10], 16)
    params["cnn_fc_w"] = lin(ks[1], 16, 128)
    params["cnn_fc_b"] = bias(ks[11], 128)
    # ViT branch
    params["embed_w"] = lin(ks[2], 48, D)
    params["embed_b"] = bias(ks[12], D)
    params["pos_embed"] = 0.02 * jax.random.normal(ks[3], (16, D), jnp.float32)
    wq, wk, wv = lin(ks[4], D, D), lin(ks[5], D, D), lin(ks[6], D, D)
    params["wqkv"] = jnp.concatenate([wq, wk, wv], axis=1)  # [D, 3D]
    params["wo"] = lin(ks[7], D, D)
    params["vit_out_w"] = lin(ks[8], D, 768)
    params["vit_out_b"] = bias(ks[13], 768)
    # Fusion head: nn.Linear(128 + 768, 512), split along K for in-kernel fusion
    fc_w = lin(ks[9], 128 + 768, 512)
    params["fc_w_cnn"] = fc_w[:128, :]                      # [128, 512]
    params["fc_w_vit"] = fc_w[128:, :]                      # [768, 512]
    params["fc_b"] = bias(ks[14], 512)
    return params


# ----------------------------------------------------------------------------
# Forward pass: one pallas_call for the whole model
# ----------------------------------------------------------------------------
def hybrid_forward(params, x):
    B, C, H, W = x.shape
    P = 4
    Np = (H // P) * (W // P)
    HW = H * W
    D = params["embed_w"].shape[1]
    K9 = C * 9
    PD = C * P * P

    cols = im2col_3x3_pad1(x).astype(jnp.bfloat16)                     # [B*HW, C*9]
    patches = patchify(x, P).reshape(B * Np, PD).astype(jnp.bfloat16)  # [B*Np, C*P*P]

    kernel = functools.partial(_fused_kernel, d=D,
                               inv_hw=1.0 / HW, inv_np=1.0 / Np)

    out = pl.pallas_call(
        kernel,
        out_shape=jax.ShapeDtypeStruct((B, 1, 512), jnp.float32),
        grid=(B,),
        in_specs=[
            pl.BlockSpec((HW, K9), lambda i: (i, 0)),        # cols   (per sample)
            pl.BlockSpec((Np, PD), lambda i: (i, 0)),        # patches(per sample)
            pl.BlockSpec((Np, D), lambda i: (0, 0)),         # pos_embed
            pl.BlockSpec((K9, 16), lambda i: (0, 0)),        # conv_w
            pl.BlockSpec((1, 16), lambda i: (0, 0)),         # conv_b
            pl.BlockSpec((16, 128), lambda i: (0, 0)),       # cnn_fc_w
            pl.BlockSpec((1, 128), lambda i: (0, 0)),        # cnn_fc_b
            pl.BlockSpec((PD, D), lambda i: (0, 0)),         # embed_w
            pl.BlockSpec((1, D), lambda i: (0, 0)),          # embed_b
            pl.BlockSpec((D, 3 * D), lambda i: (0, 0)),      # wqkv
            pl.BlockSpec((D, D), lambda i: (0, 0)),          # wo
            pl.BlockSpec((D, 768), lambda i: (0, 0)),        # vit_out_w
            pl.BlockSpec((1, 768), lambda i: (0, 0)),        # vit_out_b
            pl.BlockSpec((128, 512), lambda i: (0, 0)),      # fc_w_cnn
            pl.BlockSpec((768, 512), lambda i: (0, 0)),      # fc_w_vit
            pl.BlockSpec((1, 512), lambda i: (0, 0)),        # fc_b
        ],
        out_specs=pl.BlockSpec((1, 1, 512), lambda i: (i, 0, 0)),
        compiler_params=pltpu.CompilerParams(
            dimension_semantics=("parallel",)),
    )(cols, patches, params["pos_embed"],
      params["conv_w"], params["conv_b"],
      params["cnn_fc_w"], params["cnn_fc_b"],
      params["embed_w"], params["embed_b"],
      params["wqkv"], params["wo"],
      params["vit_out_w"], params["vit_out_b"],
      params["fc_w_cnn"], params["fc_w_vit"], params["fc_b"])

    return out.reshape(B, 512)


# ----------------------------------------------------------------------------
if __name__ == "__main__":
    key = jax.random.PRNGKey(0)
    k_x, k_p = jax.random.split(key)

    x = jax.random.normal(k_x, (2, 3, 16, 16), jnp.float32)  # NCHW
    params = init_params(k_p)

    out = jax.jit(hybrid_forward)(params, x)
    out = jax.block_until_ready(out)

    assert out.shape == (2, 512), out.shape
    assert bool(jnp.all(jnp.isfinite(out)))
    print("KERNEL_OK")
</pallas_src>

<mosaic_0001>
module attributes {stable_mosaic.version = 11 : i64} {
  func.func @_fused_kernel(%arg0: i32, %arg1: memref<256x27xbf16, #tpu.memory_space<vmem>>, %arg2: memref<16x48xbf16, #tpu.memory_space<vmem>>, %arg3: memref<16x192xf32, #tpu.memory_space<vmem>>, %arg4: memref<27x16xbf16, #tpu.memory_space<vmem>>, %arg5: memref<1x16xf32, #tpu.memory_space<vmem>>, %arg6: memref<16x128xbf16, #tpu.memory_space<vmem>>, %arg7: memref<1x128xf32, #tpu.memory_space<vmem>>, %arg8: memref<48x192xbf16, #tpu.memory_space<vmem>>, %arg9: memref<1x192xf32, #tpu.memory_space<vmem>>, %arg10: memref<192x576xbf16, #tpu.memory_space<vmem>>, %arg11: memref<192x192xbf16, #tpu.memory_space<vmem>>, %arg12: memref<192x768xbf16, #tpu.memory_space<vmem>>, %arg13: memref<1x768xf32, #tpu.memory_space<vmem>>, %arg14: memref<128x512xbf16, #tpu.memory_space<vmem>>, %arg15: memref<768x512xbf16, #tpu.memory_space<vmem>>, %arg16: memref<1x512xf32, #tpu.memory_space<vmem>>, %arg17: memref<1x1x512xf32, #tpu.memory_space<vmem>>) attributes {dimension_semantics = [#tpu.dimension_semantics<parallel>], iteration_bounds = array<i64: 2>, scalar_prefetch = 0 : i64, scratch_operands = 0 : i64, tpu.core_type = #tpu.core_type<tc>, window_params = [{transform_indices = @transform_0, window_bounds = array<i64: 256, 27>}, {transform_indices = @transform_1, window_bounds = array<i64: 16, 48>}, {pipeline_mode = #tpu.pipeline_mode<synchronous>, transform_indices = @transform_2, window_bounds = array<i64: 16, 192>}, {pipeline_mode = #tpu.pipeline_mode<synchronous>, transform_indices = @transform_3, window_bounds = array<i64: 27, 16>}, {pipeline_mode = #tpu.pipeline_mode<synchronous>, transform_indices = @transform_4, window_bounds = array<i64: 1, 16>}, {pipeline_mode = #tpu.pipeline_mode<synchronous>, transform_indices = @transform_5, window_bounds = array<i64: 16, 128>}, {pipeline_mode = #tpu.pipeline_mode<synchronous>, transform_indices = @transform_6, window_bounds = array<i64: 1, 128>}, {pipeline_mode = #tpu.pipeline_mode<synchronous>, transform_indices = @transform_7, window_bounds = array<i64: 48, 192>}, {pipeline_mode = #tpu.pipeline_mode<synchronous>, transform_indices = @transform_8, window_bounds = array<i64: 1, 192>}, {pipeline_mode = #tpu.pipeline_mode<synchronous>, transform_indices = @transform_9, window_bounds = array<i64: 192, 576>}, {pipeline_mode = #tpu.pipeline_mode<synchronous>, transform_indices = @transform_10, window_bounds = array<i64: 192, 192>}, {pipeline_mode = #tpu.pipeline_mode<synchronous>, transform_indices = @transform_11, window_bounds = array<i64: 192, 768>}, {pipeline_mode = #tpu.pipeline_mode<synchronous>, transform_indices = @transform_12, window_bounds = array<i64: 1, 768>}, {pipeline_mode = #tpu.pipeline_mode<synchronous>, transform_indices = @transform_13, window_bounds = array<i64: 128, 512>}, {pipeline_mode = #tpu.pipeline_mode<synchronous>, transform_indices = @transform_14, window_bounds = array<i64: 768, 512>}, {pipeline_mode = #tpu.pipeline_mode<synchronous>, transform_indices = @transform_15, window_bounds = array<i64: 1, 512>}, {transform_indices = @transform_16, window_bounds = array<i64: 1, 1, 512>}]} {
    %c0 = arith.constant 0 : index
    %c0_0 = arith.constant 0 : index
    %0 = vector.load %arg1[%c0, %c0_0] : memref<256x27xbf16, #tpu.memory_space<vmem>>, vector<256x27xbf16>
    %c0_1 = arith.constant 0 : index
    %c0_2 = arith.constant 0 : index
    %1 = vector.load %arg4[%c0_1, %c0_2] : memref<27x16xbf16, #tpu.memory_space<vmem>>, vector<27x16xbf16>
    %cst = arith.constant dense<0.000000e+00> : vector<256x16xf32>
    %2 = tpu.matmul %0, %1, %cst {dimension_numbers = #tpu.dot_dimension_numbers<[1], [0], [0], [1], [0, 0, 1, 1], [], []>} : vector<256x27xbf16>, vector<27x16xbf16>, vector<256x16xf32> -> vector<256x16xf32>
    %c0_3 = arith.constant 0 : index
    %c0_4 = arith.constant 0 : index
    %3 = vector.load %arg5[%c0_3, %c0_4] : memref<1x16xf32, #tpu.memory_space<vmem>>, vector<1x16xf32>
    %4 = vector.broadcast %3 : vector<1x16xf32> to vector<256x16xf32>
    %5 = arith.addf %2, %4 : vector<256x16xf32>
    %cst_5 = arith.constant 0.000000e+00 : f32
    %6 = vector.broadcast %cst_5 : f32 to vector<256x16xf32>
    %7 = arith.maximumf %5, %6 : vector<256x16xf32>
    %cst_6 = arith.constant dense<0.000000e+00> : vector<16xf32>
    %8 = vector.multi_reduction <add>, %7, %cst_6 [0] : vector<256x16xf32> to vector<16xf32>
    %9 = vector.shape_cast %8 : vector<16xf32> to vector<1x16xf32>
    %cst_7 = arith.constant 3.906250e-03 : f32
    %10 = vector.broadcast %cst_7 : f32 to vector<1x16xf32>
    %11 = arith.mulf %9, %10 : vector<1x16xf32>
    %12 = arith.truncf %11 : vector<1x16xf32> to vector<1x16xbf16>
    %c0_8 = arith.constant 0 : index
    %c0_9 = arith.constant 0 : index
    %13 = vector.load %arg6[%c0_8, %c0_9] : memref<16x128xbf16, #tpu.memory_space<vmem>>, vector<16x128xbf16>
    %cst_10 = arith.constant dense<0.000000e+00> : vector<1x128xf32>
    %14 = tpu.matmul %12, %13, %cst_10 {dimension_numbers = #tpu.dot_dimension_numbers<[1], [0], [0], [1], [0, 0, 1, 1], [], []>} : vector<1x16xbf16>, vector<16x128xbf16>, vector<1x128xf32> -> vector<1x128xf32>
    %c0_11 = arith.constant 0 : index
    %c0_12 = arith.constant 0 : index
    %15 = vector.load %arg7[%c0_11, %c0_12] : memref<1x128xf32, #tpu.memory_space<vmem>>, vector<1x128xf32>
    %16 = arith.addf %14, %15 : vector<1x128xf32>
    %c0_13 = arith.constant 0 : index
    %c0_14 = arith.constant 0 : index
    %17 = vector.load %arg2[%c0_13, %c0_14] : memref<16x48xbf16, #tpu.memory_space<vmem>>, vector<16x48xbf16>
    %c0_15 = arith.constant 0 : index
    %c0_16 = arith.constant 0 : index
    %18 = vector.load %arg8[%c0_15, %c0_16] : memref<48x192xbf16, #tpu.memory_space<vmem>>, vector<48x192xbf16>
    %cst_17 = arith.constant dense<0.000000e+00> : vector<16x192xf32>
    %19 = tpu.matmul %17, %18, %cst_17 {dimension_numbers = #tpu.dot_dimension_numbers<[1], [0], [0], [1], [0, 0, 1, 1], [], []>} : vector<16x48xbf16>, vector<48x192xbf16>, vector<16x192xf32> -> vector<16x192xf32>
    %c0_18 = arith.constant 0 : index
    %c0_19 = arith.constant 0 : index
    %20 = vector.load %arg9[%c0_18, %c0_19] : memref<1x192xf32, #tpu.memory_space<vmem>>, vector<1x192xf32>
    %21 = vector.broadcast %20 : vector<1x192xf32> to vector<16x192xf32>
    %22 = arith.addf %19, %21 : vector<16x192xf32>
    %c0_20 = arith.constant 0 : index
    %c0_21 = arith.constant 0 : index
    %23 = vector.load %arg3[%c0_20, %c0_21] : memref<16x192xf32, #tpu.memory_space<vmem>>, vector<16x192xf32>
    %24 = arith.addf %22, %23 : vector<16x192xf32>
    %25 = arith.truncf %24 : vector<16x192xf32> to vector<16x192xbf16>
    %c0_22 = arith.constant 0 : index
    %c0_23 = arith.constant 0 : index
    %26 = vector.load %arg10[%c0_22, %c0_23] : memref<192x576xbf16, #tpu.memory_space<vmem>>, vector<192x576xbf16>
    %cst_24 = arith.constant dense<0.000000e+00> : vector<16x576xf32>
    %27 = tpu.matmul %25, %26, %cst_24 {dimension_numbers = #tpu.dot_dimension_numbers<[1], [0], [0], [1], [0, 0, 1, 1], [], []>} : vector<16x192xbf16>, vector<192x576xbf16>, vector<16x576xf32> -> vector<16x576xf32>
    %28 = vector.extract_strided_slice %27 {offsets = [0, 0], sizes = [16, 192], strides = [1, 1]} : vector<16x576xf32> to vector<16x192xf32>
    %29 = vector.extract_strided_slice %27 {offsets = [0, 192], sizes = [16, 192], strides = [1, 1]} : vector<16x576xf32> to vector<16x192xf32>
    %30 = vector.extract_strided_slice %27 {offsets = [0, 384], sizes = [16, 192], strides = [1, 1]} : vector<16x576xf32> to vector<16x192xf32>
    %31 = arith.truncf %28 : vector<16x192xf32> to vector<16x192xbf16>
    %32 = arith.truncf %29 : vector<16x192xf32> to vector<16x192xbf16>
    %cst_25 = arith.constant dense<0.000000e+00> : vector<16x16xf32>
    %33 = tpu.matmul %31, %32, %cst_25 {dimension_numbers = #tpu.dot_dimension_numbers<[1], [1], [0], [0], [0, 0, 1, 0], [], []>} : vector<16x192xbf16>, vector<16x192xbf16>, vector<16x16xf32> -> vector<16x16xf32>
    %cst_26 = arith.constant 0.0721687824 : f32
    %34 = vector.broadcast %cst_26 : f32 to vector<16x16xf32>
    %35 = arith.mulf %33, %34 : vector<16x16xf32>
    %cst_27 = arith.constant dense<0xFF800000> : vector<16xf32>
    %36 = vector.multi_reduction <maximumf>, %35, %cst_27 [1] : vector<16x16xf32> to vector<16xf32>
    %37 = vector.shape_cast %36 : vector<16xf32> to vector<16x1xf32>
    %38 = vector.broadcast %37 : vector<16x1xf32> to vector<16x16xf32>
    %39 = arith.subf %35, %38 : vector<16x16xf32>
    %40 = math.exp %39 : vector<16x16xf32>
    %cst_28 = arith.constant dense<0.000000e+00> : vector<16xf32>
    %41 = vector.multi_reduction <add>, %40, %cst_28 [1] : vector<16x16xf32> to vector<16xf32>
    %42 = vector.shape_cast %41 : vector<16xf32> to vector<16x1xf32>
    %43 = tpu.reciprocal %42 {approx = true} : vector<16x1xf32> -> vector<16x1xf32>
    %44 = vector.broadcast %43 : vector<16x1xf32> to vector<16x16xf32>
    %45 = arith.mulf %40, %44 : vector<16x16xf32>
    %46 = arith.truncf %45 : vector<16x16xf32> to vector<16x16xbf16>
    %47 = arith.truncf %30 : vector<16x192xf32> to vector<16x192xbf16>
    %cst_29 = arith.constant dense<0.000000e+00> : vector<16x192xf32>
    %48 = tpu.matmul %46, %47, %cst_29 {dimension_numbers = #tpu.dot_dimension_numbers<[1], [0], [0], [1], [0, 0, 1, 1], [], []>} : vector<16x16xbf16>, vector<16x192xbf16>, vector<16x192xf32> -> vector<16x192xf32>
    %49 = arith.truncf %48 : vector<16x192xf32> to vector<16x192xbf16>
    %c0_30 = arith.constant 0 : index
    %c0_31 = arith.constant 0 : index
    %50 = vector.load %arg11[%c0_30, %c0_31] : memref<192x192xbf16, #tpu.memory_space<vmem>>, vector<192x192xbf16>
    %cst_32 = arith.constant dense<0.000000e+00> : vector<16x192xf32>
    %51 = tpu.matmul %49, %50, %cst_32 {dimension_numbers = #tpu.dot_dimension_numbers<[1], [0], [0], [1], [0, 0, 1, 1], [], []>} : vector<16x192xbf16>, vector<192x192xbf16>, vector<16x192xf32> -> vector<16x192xf32>
    %52 = arith.addf %51, %24 : vector<16x192xf32>
    %cst_33 = arith.constant dense<0.000000e+00> : vector<192xf32>
    %53 = vector.multi_reduction <add>, %52, %cst_33 [0] : vector<16x192xf32> to vector<192xf32>
    %54 = vector.shape_cast %53 : vector<192xf32> to vector<1x192xf32>
    %cst_34 = arith.constant 6.250000e-02 : f32
    %55 = vector.broadcast %cst_34 : f32 to vector<1x192xf32>
    %56 = arith.mulf %54, %55 : vector<1x192xf32>
    %57 = arith.truncf %56 : vector<1x192xf32> to vector<1x192xbf16>
    %c0_35 = arith.constant 0 : index
    %c0_36 = arith.constant 0 : index
    %58 = vector.load %arg12[%c0_35, %c0_36] : memref<192x768xbf16, #tpu.memory_space<vmem>>, vector<192x768xbf16>
    %cst_37 = arith.constant dense<0.000000e+00> : vector<1x768xf32>
    %59 = tpu.matmul %57, %58, %cst_37 {dimension_numbers = #tpu.dot_dimension_numbers<[1], [0], [0], [1], [0, 0, 1, 1], [], []>} : vector<1x192xbf16>, vector<192x768xbf16>, vector<1x768xf32> -> vector<1x768xf32>
    %c0_38 = arith.constant 0 : index
    %c0_39 = arith.constant 0 : index
    %60 = vector.load %arg13[%c0_38, %c0_39] : memref<1x768xf32, #tpu.memory_space<vmem>>, vector<1x768xf32>
    %61 = arith.addf %59, %60 : vector<1x768xf32>
    %62 = arith.truncf %16 : vector<1x128xf32> to vector<1x128xbf16>
    %c0_40 = arith.constant 0 : index
    %c0_41 = arith.constant 0 : index
    %63 = vector.load %arg14[%c0_40, %c0_41] : memref<128x512xbf16, #tpu.memory_space<vmem>>, vector<128x512xbf16>
    %cst_42 = arith.constant dense<0.000000e+00> : vector<1x512xf32>
    %64 = tpu.matmul %62, %63, %cst_42 {dimension_numbers = #tpu.dot_dimension_numbers<[1], [0], [0], [1], [0, 0, 1, 1], [], []>} : vector<1x128xbf16>, vector<128x512xbf16>, vector<1x512xf32> -> vector<1x512xf32>
    %65 = arith.truncf %61 : vector<1x768xf32> to vector<1x768xbf16>
    %c0_43 = arith.constant 0 : index
    %c0_44 = arith.constant 0 : index
    %66 = vector.load %arg15[%c0_43, %c0_44] : memref<768x512xbf16, #tpu.memory_space<vmem>>, vector<768x512xbf16>
    %cst_45 = arith.constant dense<0.000000e+00> : vector<1x512xf32>
    %67 = tpu.matmul %65, %66, %cst_45 {dimension_numbers = #tpu.dot_dimension_numbers<[1], [0], [0], [1], [0, 0, 1, 1], [], []>} : vector<1x768xbf16>, vector<768x512xbf16>, vector<1x512xf32> -> vector<1x512xf32>
    %68 = arith.addf %64, %67 : vector<1x512xf32>
    %c0_46 = arith.constant 0 : index
    %c0_47 = arith.constant 0 : index
    %69 = vector.load %arg16[%c0_46, %c0_47] : memref<1x512xf32, #tpu.memory_space<vmem>>, vector<1x512xf32>
    %70 = arith.addf %68, %69 : vector<1x512xf32>
    %71 = vector.shape_cast %70 : vector<1x512xf32> to vector<1x1x512xf32>
    %c0_48 = arith.constant 0 : index
    %c0_49 = arith.constant 0 : index
    %c0_50 = arith.constant 0 : index
    %72 = vector.load %arg17[%c0_48, %c0_49, %c0_50] : memref<1x1x512xf32, #tpu.memory_space<vmem>>, vector<1x1x512xf32>
    tpu.vector_store %arg17[%c0_48, %c0_49, %c0_50], %71 {strides = array<i32>} : memref<1x1x512xf32, #tpu.memory_space<vmem>>, vector<1x1x512xf32>,
    return
  }
  func.func @transform_0(%arg0: i32) -> (i32, i32) {
    %c0_i32 = arith.constant 0 : i32
    %c0_i32_0 = arith.constant 0 : i32
    return %arg0, %c0_i32 : i32, i32
  }
  func.func @transform_1(%arg0: i32) -> (i32, i32) {
    %c0_i32 = arith.constant 0 : i32
    %c0_i32_0 = arith.constant 0 : i32
    return %arg0, %c0_i32 : i32, i32
  }
  func.func @transform_2(%arg0: i32) -> (i32, i32) {
    %c0_i32 = arith.constant 0 : i32
    %c0_i32_0 = arith.constant 0 : i32
    %c0_i32_1 = arith.constant 0 : i32
    return %c0_i32, %c0_i32_0 : i32, i32
  }
  func.func @transform_3(%arg0: i32) -> (i32, i32) {
    %c0_i32 = arith.constant 0 : i32
    %c0_i32_0 = arith.constant 0 : i32
    %c0_i32_1 = arith.constant 0 : i32
    return %c0_i32, %c0_i32_0 : i32, i32
  }
  func.func @transform_4(%arg0: i32) -> (i32, i32) {
    %c0_i32 = arith.constant 0 : i32
    %c0_i32_0 = arith.constant 0 : i32
    %c0_i32_1 = arith.constant 0 : i32
    return %c0_i32, %c0_i32_0 : i32, i32
  }
  func.func @transform_5(%arg0: i32) -> (i32, i32) {
    %c0_i32 = arith.constant 0 : i32
    %c0_i32_0 = arith.constant 0 : i32
    %c0_i32_1 = arith.constant 0 : i32
    return %c0_i32, %c0_i32_0 : i32, i32
  }
  func.func @transform_6(%arg0: i32) -> (i32, i32) {
    %c0_i32 = arith.constant 0 : i32
    %c0_i32_0 = arith.constant 0 : i32
    %c0_i32_1 = arith.constant 0 : i32
    return %c0_i32, %c0_i32_0 : i32, i32
  }
  func.func @transform_7(%arg0: i32) -> (i32, i32) {
    %c0_i32 = arith.constant 0 : i32
    %c0_i32_0 = arith.constant 0 : i32
    %c0_i32_1 = arith.constant 0 : i32
    return %c0_i32, %c0_i32_0 : i32, i32
  }
  func.func @transform_8(%arg0: i32) -> (i32, i32) {
    %c0_i32 = arith.constant 0 : i32
    %c0_i32_0 = arith.constant 0 : i32
    %c0_i32_1 = arith.constant 0 : i32
    return %c0_i32, %c0_i32_0 : i32, i32
  }
  func.func @transform_9(%arg0: i32) -> (i32, i32) {
    %c0_i32 = arith.constant 0 : i32
    %c0_i32_0 = arith.constant 0 : i32
    %c0_i32_1 = arith.constant 0 : i32
    return %c0_i32, %c0_i32_0 : i32, i32
  }
  func.func @transform_10(%arg0: i32) -> (i32, i32) {
    %c0_i32 = arith.constant 0 : i32
    %c0_i32_0 = arith.constant 0 : i32
    %c0_i32_1 = arith.constant 0 : i32
    return %c0_i32, %c0_i32_0 : i32, i32
  }
  func.func @transform_11(%arg0: i32) -> (i32, i32) {
    %c0_i32 = arith.constant 0 : i32
    %c0_i32_0 = arith.constant 0 : i32
    %c0_i32_1 = arith.constant 0 : i32
    return %c0_i32, %c0_i32_0 : i32, i32
  }
  func.func @transform_12(%arg0: i32) -> (i32, i32) {
    %c0_i32 = arith.constant 0 : i32
    %c0_i32_0 = arith.constant 0 : i32
    %c0_i32_1 = arith.constant 0 : i32
    return %c0_i32, %c0_i32_0 : i32, i32
  }
  func.func @transform_13(%arg0: i32) -> (i32, i32) {
    %c0_i32 = arith.constant 0 : i32
    %c0_i32_0 = arith.constant 0 : i32
    %c0_i32_1 = arith.constant 0 : i32
    return %c0_i32, %c0_i32_0 : i32, i32
  }
  func.func @transform_14(%arg0: i32) -> (i32, i32) {
    %c0_i32 = arith.constant 0 : i32
    %c0_i32_0 = arith.constant 0 : i32
    %c0_i32_1 = arith.constant 0 : i32
    return %c0_i32, %c0_i32_0 : i32, i32
  }
  func.func @transform_15(%arg0: i32) -> (i32, i32) {
    %c0_i32 = arith.constant 0 : i32
    %c0_i32_0 = arith.constant 0 : i32
    %c0_i32_1 = arith.constant 0 : i32
    return %c0_i32, %c0_i32_0 : i32, i32
  }
  func.func @transform_16(%arg0: i32) -> (i32, i32, i32) {
    %c0_i32 = arith.constant 0 : i32
    %c0_i32_0 = arith.constant 0 : i32
    %c0_i32_1 = arith.constant 0 : i32
    return %arg0, %c0_i32, %c0_i32_0 : i32, i32, i32
  }
}

</mosaic_0001>

<bundles_post_ra>
// kernel: hybrid_forward.1
= control target key start
LH: loop header
LB: loop body
LE: loop exit
PB: predicated region body
PF: predicated region fallthrough
CT: control target
= control target key end

     0   :  { %s5640_s21 = smov 0   ;;  %s7076_s0 = inlined_call_operand.vmem [shape: bf16[512,27], index: 0, kind: input, shape index: {}]   ;;  %s7077_s1 = inlined_call_operand.vmem [shape: bf16[32,48], index: 1, kind: input, shape index: {}]   ;;  %s7078_s2 = inlined_call_operand.vmem [shape: f32[16,192], index: 2, kind: input, shape index: {}]   ;;  %s7079_s3 = inlined_call_operand.vmem [shape: bf16[27,16], index: 3, kind: input, shape index: {}]   ;;  %s7080_s4 = inlined_call_operand.vmem [shape: f32[1,16], index: 4, kind: input, shape index: {}]   ;;  %s7081_s5 = inlined_call_operand.vmem [shape: bf16[16,128], index: 5, kind: input, shape index: {}]   ;;  %s7082_s6 = inlined_call_operand.vmem [shape: f32[1,128], index: 6, kind: input, shape index: {}]   ;;  %s7083_s7 = inlined_call_operand.vmem [shape: bf16[48,192], index: 7, kind: input, shape index: {}]   ;;  %s7084_s8 = inlined_call_operand.vmem [shape: f32[1,192], index: 8, kind: input, shape index: {}]   ;;  %s7085_s9 = inlined_call_operand.vmem [shape: bf16[192,576], index: 9, kind: input, shape index: {}]   ;;  %s7086_s10 = inlined_call_operand.vmem [shape: bf16[192,192], index: 10, kind: input, shape index: {}]   ;;  %s7087_s11 = inlined_call_operand.vmem [shape: bf16[192,768], index: 11, kind: input, shape index: {}]   ;;  %s7088_s12 = inlined_call_operand.vmem [shape: f32[1,768], index: 12, kind: input, shape index: {}]   ;;  %s7089_s13 = inlined_call_operand.vmem [shape: bf16[128,512], index: 13, kind: input, shape index: {}]   ;;  %s7090_s14 = inlined_call_operand.vmem [shape: bf16[768,512], index: 14, kind: input, shape index: {}]   ;;  %s7091_s15 = inlined_call_operand.vmem [shape: f32[1,512], index: 15, kind: input, shape index: {}]   ;;  %s7092_s16 = inlined_call_operand.vmem [shape: f32[2,1,512], index: 16, kind: output, shape index: {}]  }
   0x1   :  { %7093 = sst [smem:[#allocation2_spill]] %s7076_s0 }
   0x2 LB: > { %s5646_s22 = sadd.s32 4294967295, %s5547_s21   ;;  %p4421_p0 = scmp.ge.s32.totalorder %s5547_s21, 1  ;;  %s5547_s21 = sphi %s5640_s21, %s26_s21  }
   0x3   : > { %p474_p1 = scmp.lt.s32.totalorder %s5547_s21, 3 }
   0x5   : > { %p475_p2 = pnand %p4421_p0, %p474_p1 }
   0x6   : > { %v4940_v0 = vld [vmem:[%s7079_s3] sm:$0xff] (!%p475_p2)   ;;  %vm728_vm0 = vcmask (!%p475_p2), 1044480   ;;  %v4941_v1 = vld [vmem:[%s7079_s3 + $0x8] sm:$0x3f] (!%p475_p2)   ;;  %vm729_vm1 = vcmask (!%p475_p2), 1045504   ;;  %s4422_s27 = sshll.u32 (!%p475_p2), %s5646_s22, 5 }
   0x7   : > { %478 = sbr.rel (%p475_p2) target bundleno = 2489 (0x9b9), region = 84  ;;  %4884 = vmatprep.subr.bf16.mxu0 (!%p475_p2), %v4940_v0  ;;  %v5549_v2 = vmov (!%p475_p2), 65535   ;;  %p529_p3 = scmp.lt.s32.totalorder (!%p475_p2), %s4422_s27, 63  ;;  %vm679_vm2 = vcmask (!%p475_p2), 220160   ;;  %v4958_v22 = vld [vmem:[%s7081_s5] sm:$0xff] (!%p475_p2)   ;;  %v5550_v23 = vmov (!%p475_p2), 0.0  }
   0x8   : > { %4885 = vmatpush3.bf16.msra.mxu0 (!%p475_p2), %v4940_v0  ;;  %v730_v3 = vsel (!%p475_p2), %vm728_vm0, 4294967295, %v5549_v2  ;;  %s7094_s0 = sld [smem:[#allocation2_spill]] (!%p475_p2)  ;;  %4920 = vmatprep.subr.bf16.mxu1 (!%p475_p2), %v5550_v23  ;;  %vm5551_vm3 = vmmov (!%p475_p2), 0   ;;  %v4961_v24 = vld [vmem:[%s7083_s7 + $0x4] ss:$8 sps:$4 sm:$0xff] (!%p475_p2)   ;;  %s4424_s24 = sshll.u32 (!%p475_p2), %s5646_s22, 1 }
   0x9   : > { %v731_v4 = vsel (!%p475_p2), %vm729_vm1, %v730_v3, 0  ;;  %4922 = vmatprep.mubr.msk.bf16.mxu1 (!%p475_p2), %vm5551_vm3, %v5550_v23  ;;  %4921 = vmatpush3.bf16.msra.mxu1 (!%p475_p2), %v4958_v22  ;;  %p535_p4 = scmp.lt.s32.totalorder (!%p475_p2), %s4424_s24, 3  ;;  %v4969_v25 = vld [vmem:[%s7085_s9 + $0x8] ss:$20 sps:$4 sm:$0xff] (!%p475_p2)   ;;  %v4971_v26 = vld [vmem:[%s7085_s9 + $0xc] ss:$20 sps:$4 sm:$0xff] (!%p475_p2)  }
   0xa   : > { %v733_v5 = vand.u32 (!%p475_p2), %v4941_v1, %v731_v4  ;;  %1111 = vmatprep.subr.bf16.mxu1 (!%p475_p2), %v4961_v24  ;;  %v4974_v27 = vld [vmem:[%s7085_s9 + $0x34] ss:$20 sps:$4 sm:$0xff] (!%p475_p2)   ;;  %v4972_v28 = vld [vmem:[%s7085_s9 + $0x30] ss:$20 sps:$4 sm:$0xff] (!%p475_p2)   ;;  %v4978_v30 = vld [vmem:[%s7085_s9 + $0x58] ss:$20 sps:$4 sm:$0xff] (!%p475_p2)  }
   0xb   : > { %v4980_v29 = vld [vmem:[%s7085_s9 + $0x5c] ss:$20 sps:$4 sm:$0xff] (!%p475_p2)   ;;  %v4986_v31 = vld [vmem:[%s7085_s9 + $0x84] ss:$20 sps:$4 sm:$0xff] (!%p475_p2)   ;;  %v4984_v32 = vld [vmem:[%s7085_s9 + $0x80] ss:$20 sps:$4 sm:$0xff] (!%p475_p2)  }
   0xc   : > { %4886 = vmatprep.subr.bf16.mxu0 (!%p475_p2), %v733_v5  ;;  %v4995_v33 = vld [vmem:[%s7085_s9 + $0xac] ss:$20 sps:$4 sm:$0xff] (!%p475_p2)   ;;  %v4993_v34 = vld [vmem:[%s7085_s9 + $0xa8] ss:$20 sps:$4 sm:$0xff] (!%p475_p2)   ;;  %v4999_v36 = vld [vmem:[%s7085_s9 + $0xd0] ss:$20 sps:$4 sm:$0xff] (!%p475_p2)  }
   0xd   : > { %4887 = vmatpush3.bf16.msra.mxu0 (!%p475_p2), %v733_v5  ;;  %v5001_v35 = vld [vmem:[%s7085_s9 + $0xd4] ss:$20 sps:$4 sm:$0xff] (!%p475_p2)   ;;  %v5007_v37 = vld [vmem:[%s7085_s9 + $0xfc] ss:$20 sps:$4 sm:$0xff] (!%p475_p2)   ;;  %v5005_v38 = vld [vmem:[%s7085_s9 + $0xf8] ss:$20 sps:$4 sm:$0xff] (!%p475_p2)  }
   0xe   : > { %s7096_s27 = smov (!%p529_p3, %s4422_s27), 63  ;;  %s7098_s24 = smov (!%p535_p4, %s4424_s24), 3  ;;  %1595 = vmatprep.subr.bf16.mxu0 %v4971_v26  ;;  %v5751_v39 = vld [vmem:[%s7080_s4] ss:$0 sm:$0xff]  ;;  %vm928_vm4 = vcmask 130048   ;;  %vm1107_vm5 = vcmask 392192  }
   0xf   : > { %s4423_s28 = sshll.u32 %s7096_s27, 2  ;;  %s4425_s25 = sshll.u32 %s7098_s24, 2  ;;  %vm1548_vm6 = vcmask 523264  }
  0x10   : > { %s5660_s17 = scalar_lea.vmem %s7094_s0, %s4423_s28  ;;  %s5704_s28 = scalar_lea.vmem %s7077_s1, %s4425_s25 }
  0x11   : > { %v4942_v6 = vld [vmem:[%s5660_s17] sm:$0xff]   ;;  %v4943_v7 = vld [vmem:[%s5660_s17 + $0x8] sm:$0xff]   ;;  %v4944_v8 = vld [vmem:[%s5660_s17 + $0x10] sm:$0xff]   ;;  %s5553_s0 = smov 64   ;;  %p540_p5 = scmp.lt.s32.totalorder %s5646_s22, 1 }
  0x12   : > { %4888 = vmatprep.mubr.msk.bf16.mxu0 %vm679_vm2, %v4942_v6  ;;  %v4945_v9 = vld [vmem:[%s5660_s17 + $0x18] sm:$0xff]   ;;  %v4946_v10 = vld [vmem:[%s5660_s17 + $0x20] sm:$0xff]   ;;  %v4947_v11 = vld [vmem:[%s5660_s17 + $0x28] sm:$0xff]  }
  0x13   : > { %4889 = vmatmul.mubr.msk.bf16.vlgmr.msra.gmra.mrb[0].mxu0 %vm679_vm2, %v4943_v7  ;;  %v4948_v12 = vld [vmem:[%s5660_s17 + $0x30] sm:$0xff]   ;;  %v4949_v13 = vld [vmem:[%s5660_s17 + $0x38] sm:$0xff]   ;;  %v4950_v14 = vld [vmem:[%s5660_s17 + $0x40] sm:$0xff]   ;;  %s7100_s22 = smov (!%p540_p5, %s5646_s22), 1 }
  0x14   : > { %4892 = vmatprep.mubr.msk.bf16.mxu0 %vm679_vm2, %v4944_v8  ;;  %v4951_v15 = vld [vmem:[%s5660_s17 + $0x48] sm:$0xff]   ;;  %v4952_v16 = vld [vmem:[%s5660_s17 + $0x50] sm:$0xff]   ;;  %v4953_v17 = vld [vmem:[%s5660_s17 + $0x58] sm:$0xff]   ;;  %1596 = vmatpush1.bf16.msra.mxu0 %v4969_v25  ;;  %s4426_s29 = sshll.u32 %s7100_s22, 2 }
  0x15   : > { %v4954_v18 = vld [vmem:[%s5660_s17 + $0x60] sm:$0xff]   ;;  %v4955_v19 = vld [vmem:[%s5660_s17 + $0x68] sm:$0xff]   ;;  %v4956_v20 = vld [vmem:[%s5660_s17 + $0x70] sm:$0xff]   ;;  %1597 = vmatprep.subr.bf16.mxu0 %v4974_v27 }
  0x16   : > { %v4957_v21 = vld [vmem:[%s5660_s17 + $0x78] sm:$0xff]  }
  0x18   : > { %1598 = vmatpush1.bf16.msra.mxu0 %v4972_v28 }
  0x19   : > { %1599 = vmatprep.subr.bf16.mxu0 %v4980_v29 }
  0x1b   : > { %4893 = vmatmul.mubr.msk.bf16.gmra.mrb[4].mxu0 %vm679_vm2, %v4945_v9 }
  0x1c   : > { %4896 = vmatprep.mubr.msk.bf16.mxu0 %vm679_vm2, %v4946_v10  ;;  %1600 = vmatpush1.bf16.msra.mxu0 %v4978_v30 }
  0x1d   : > { %1601 = vmatprep.subr.bf16.mxu0 %v4986_v31 }
  0x20   : > { %1602 = vmatpush1.bf16.msra.mxu0 %v4984_v32 }
  0x21   : > { %1603 = vmatprep.subr.bf16.mxu0 %v4995_v33 }
  0x23   : > { %4897 = vmatmul.mubr.msk.bf16.gmra.mrb[8].mxu0 %vm679_vm2, %v4947_v11 }
  0x24   : > { %4900 = vmatprep.mubr.msk.bf16.mxu0 %vm679_vm2, %v4948_v12  ;;  %1604 = vmatpush1.bf16.msra.mxu0 %v4993_v34 }
  0x25   : > { %1605 = vmatprep.subr.bf16.mxu0 %v5001_v35 }
  0x28   : > { %1606 = vmatpush1.bf16.msra.mxu0 %v4999_v36 }
  0x29   : > { %1607 = vmatprep.subr.bf16.mxu0 %v5007_v37 }
  0x2b   : > { %4901 = vmatmul.mubr.msk.bf16.gmra.mrb[12].mxu0 %vm679_vm2, %v4949_v13 }
  0x2c   : > { %4904 = vmatprep.mubr.msk.bf16.mxu0 %vm679_vm2, %v4950_v14  ;;  %1608 = vmatpush1.bf16.msra.mxu0 %v5005_v38 }
  0x33   : > { %4905 = vmatmul.mubr.msk.bf16.gmra.mrb[16].mxu0 %vm679_vm2, %v4951_v15 }
  0x34   : > { %4908 = vmatprep.mubr.msk.bf16.mxu0 %vm679_vm2, %v4952_v16 }
  0x3b   : > { %4909 = vmatmul.mubr.msk.bf16.gmra.mrb[20].mxu0 %vm679_vm2, %v4953_v17 }
  0x3c   : > { %4912 = vmatprep.mubr.msk.bf16.mxu0 %vm679_vm2, %v4954_v18 }
  0x43   : > { %4913 = vmatmul.mubr.msk.bf16.gmra.mrb[24].mxu0 %vm679_vm2, %v4955_v19 }
  0x44   : > { %4916 = vmatprep.mubr.msk.bf16.mxu0 %vm679_vm2, %v4956_v20 }
  0x4b   : > { %4917 = vmatmul.mubr.msk.bf16.gmra.mrb[28].mxu0 %vm679_vm2, %v4957_v21 }
  0xe6   : > { %v4890_v40 = vpop.f32.mrb[0].mxu0 }
  0xe7   : > { %v769_v41 = vpop.f32.mrb[1].mxu0  ;;  %v778_v42 = vadd.f32 %v4890_v40, %v5751_v39 }
  0xe8   : > { %v770_v43 = vadd.f32 %v5751_v39, %v769_v41  ;;  %v4891_v44 = vpop.f32.mrb[2].mxu0 }
  0xe9   : > { %v772_v45 = vpop.f32.mrb[3].mxu0  ;;  %v781_v47 = vadd.f32 %v4891_v44, %v5751_v39  ;;  %v898_v49 = vmax.f32 %v778_v42, 0.0 }
  0xea   : > { %v896_v46 = vmax.f32 %v770_v43, 0.0  ;;  %v773_v48 = vadd.f32 %v5751_v39, %v772_v45 }
  0xeb   : > { %v899_v52 = vmax.f32 %v781_v47, 0.0  ;;  %v932_v57 = vsel %vm928_vm4, %v898_v49, 0.0 }
  0xec   : > { %v897_v50 = vmax.f32 %v773_v48, 0.0  ;;  %v929_v51 = vsel %vm928_vm4, %v896_v46, 0.0 }
  0xed   : > { %v934_v63 = vsel %vm928_vm4, %v899_v52, 0.0 }
  0xee   : > { %v930_v53 = vsel %vm928_vm4, %v897_v50, 0.0  ;;  %v4894_v54 = vpop.f32.mrb[4].mxu0 }
  0xef   : > { %v931_v55 = vadd.f32 %v930_v53, %v929_v51  ;;  %v785_v56 = vpop.f32.mrb[5].mxu0  ;;  %v794_v58 = vadd.f32 %v4894_v54, %v5751_v39 }
  0xf0   : > { %v786_v59 = vadd.f32 %v5751_v39, %v785_v56  ;;  %v4895_v60 = vpop.f32.mrb[6].mxu0 }
  0xf1   : > { %v933_v61 = vadd.f32 %v932_v57, %v931_v55  ;;  %v788_v62 = vpop.f32.mrb[7].mxu0  ;;  %v797_v1 = vadd.f32 %v4895_v60, %v5751_v39  ;;  %v902_v4 = vmax.f32 %v794_v58, 0.0 }
  0xf2   : > { %v900_v0 = vmax.f32 %v786_v59, 0.0  ;;  %v789_v2 = vadd.f32 %v5751_v39, %v788_v62 }
  0xf3   : > { %v935_v3 = vadd.f32 %v934_v63, %v933_v61  ;;  %v903_v8 = vmax.f32 %v797_v1, 0.0  ;;  %v940_v13 = vsel %vm928_vm4, %v902_v4, 0.0 }
  0xf4   : > { %v936_v5 = vsel %vm928_vm4, %v900_v0, 0.0  ;;  %v901_v6 = vmax.f32 %v789_v2, 0.0 }
  0xf5   : > { %v937_v7 = vadd.f32 %v936_v5, %v935_v3  ;;  %v942_v19 = vsel %vm928_vm4, %v903_v8, 0.0 }
  0xf6   : > { %v938_v9 = vsel %vm928_vm4, %v901_v6, 0.0  ;;  %v4898_v10 = vpop.f32.mrb[8].mxu0 }
  0xf7   : > { %v939_v11 = vadd.f32 %v938_v9, %v937_v7  ;;  %v801_v12 = vpop.f32.mrb[9].mxu0  ;;  %v810_v14 = vadd.f32 %v4898_v10, %v5751_v39 }
  0xf8   : > { %v802_v15 = vadd.f32 %v5751_v39, %v801_v12  ;;  %v4899_v16 = vpop.f32.mrb[10].mxu0 }
  0xf9   : > { %v941_v17 = vadd.f32 %v940_v13, %v939_v11  ;;  %v804_v18 = vpop.f32.mrb[11].mxu0  ;;  %v813_v21 = vadd.f32 %v4899_v16, %v5751_v39  ;;  %v906_v24 = vmax.f32 %v810_v14, 0.0 }
  0xfa   : > { %v904_v20 = vmax.f32 %v802_v15, 0.0  ;;  %v805_v22 = vadd.f32 %v5751_v39, %v804_v18 }
  0xfb   : > { %v943_v23 = vadd.f32 %v942_v19, %v941_v17  ;;  %v907_v28 = vmax.f32 %v813_v21, 0.0  ;;  %v948_v33 = vsel %vm928_vm4, %v906_v24, 0.0 }
  0xfc   : > { %v944_v25 = vsel %vm928_vm4, %v904_v20, 0.0  ;;  %v905_v26 = vmax.f32 %v805_v22, 0.0 }
  0xfd   : > { %v945_v27 = vadd.f32 %v944_v25, %v943_v23  ;;  %v950_v40 = vsel %vm928_vm4, %v907_v28, 0.0 }
  0xfe   : > { %v946_v29 = vsel %vm928_vm4, %v905_v26, 0.0  ;;  %v4902_v30 = vpop.f32.mrb[12].mxu0 }
  0xff   : > { %v947_v31 = vadd.f32 %v946_v29, %v945_v27  ;;  %v817_v32 = vpop.f32.mrb[13].mxu0  ;;  %v826_v34 = vadd.f32 %v4902_v30, %v5751_v39 }
 0x100   : > { %v818_v35 = vadd.f32 %v5751_v39, %v817_v32  ;;  %v4903_v36 = vpop.f32.mrb[14].mxu0 }
 0x101   : > { %v949_v37 = vadd.f32 %v948_v33, %v947_v31  ;;  %v820_v38 = vpop.f32.mrb[15].mxu0  ;;  %v829_v42 = vadd.f32 %v4903_v36, %v5751_v39  ;;  %v910_v45 = vmax.f32 %v826_v34, 0.0 }
 0x102   : > { %v908_v41 = vmax.f32 %v818_v35, 0.0  ;;  %v821_v43 = vadd.f32 %v5751_v39, %v820_v38 }
 0x103   : > { %v951_v44 = vadd.f32 %v950_v40, %v949_v37  ;;  %v911_v49 = vmax.f32 %v829_v42, 0.0  ;;  %v956_v54 = vsel %vm928_vm4, %v910_v45, 0.0 }
 0x104   : > { %v952_v46 = vsel %vm928_vm4, %v908_v41, 0.0  ;;  %v909_v47 = vmax.f32 %v821_v43, 0.0 }
 0x105   : > { %v953_v48 = vadd.f32 %v952_v46, %v951_v44  ;;  %v958_v60 = vsel %vm928_vm4, %v911_v49, 0.0 }
 0x106   : > { %v954_v50 = vsel %vm928_vm4, %v909_v47, 0.0  ;;  %v4906_v51 = vpop.f32.mrb[16].mxu0 }
 0x107   : > { %v955_v52 = vadd.f32 %v954_v50, %v953_v48  ;;  %v833_v53 = vpop.f32.mrb[17].mxu0  ;;  %v842_v55 = vadd.f32 %v4906_v51, %v5751_v39 }
 0x108   : > { %v834_v56 = vadd.f32 %v5751_v39, %v833_v53  ;;  %v4907_v57 = vpop.f32.mrb[18].mxu0 }
 0x109   : > { %v957_v58 = vadd.f32 %v956_v54, %v955_v52  ;;  %v836_v59 = vpop.f32.mrb[19].mxu0  ;;  %v845_v62 = vadd.f32 %v4907_v57, %v5751_v39  ;;  %v914_v1 = vmax.f32 %v842_v55, 0.0 }
 0x10a   : > { %v912_v61 = vmax.f32 %v834_v56, 0.0  ;;  %v837_v63 = vadd.f32 %v5751_v39, %v836_v59 }
 0x10b   : > { %v959_v0 = vadd.f32 %v958_v60, %v957_v58  ;;  %v915_v5 = vmax.f32 %v845_v62, 0.0  ;;  %v964_v10 = vsel %vm928_vm4, %v914_v1, 0.0 }
 0x10c   : > { %v960_v2 = vsel %vm928_vm4, %v912_v61, 0.0  ;;  %v913_v3 = vmax.f32 %v837_v63, 0.0 }
 0x10d   : > { %v961_v4 = vadd.f32 %v960_v2, %v959_v0  ;;  %v966_v16 = vsel %vm928_vm4, %v915_v5, 0.0 }
 0x10e   : > { %v962_v6 = vsel %vm928_vm4, %v913_v3, 0.0  ;;  %v4910_v7 = vpop.f32.mrb[20].mxu0 }
 0x10f   : > { %v963_v8 = vadd.f32 %v962_v6, %v961_v4  ;;  %v849_v9 = vpop.f32.mrb[21].mxu0  ;;  %v858_v11 = vadd.f32 %v4910_v7, %v5751_v39 }
 0x110   : > { %v850_v12 = vadd.f32 %v5751_v39, %v849_v9  ;;  %v4911_v13 = vpop.f32.mrb[22].mxu0 }
 0x111   : > { %v965_v14 = vadd.f32 %v964_v10, %v963_v8  ;;  %v852_v15 = vpop.f32.mrb[23].mxu0  ;;  %v861_v18 = vadd.f32 %v4911_v13, %v5751_v39  ;;  %v918_v21 = vmax.f32 %v858_v11, 0.0 }
 0x112   : > { %v916_v17 = vmax.f32 %v850_v12, 0.0  ;;  %v853_v19 = vadd.f32 %v5751_v39, %v852_v15  ;;  %v4959_v15 = vld [vmem:[%s7083_s7] ss:$8 sps:$4 sm:$0xff]  }
 0x113   : > { %v967_v20 = vadd.f32 %v966_v16, %v965_v14  ;;  %v919_v25 = vmax.f32 %v861_v18, 0.0  ;;  %v972_v30 = vsel %vm928_vm4, %v918_v21, 0.0  ;;  %v4962_v18 = vld [vmem:[%s7083_s7 + $0x10] ss:$8 sps:$4 sm:$0xff]   ;;  %v4965_v21 = vld [vmem:[%s7083_s7 + $0x20] ss:$8 sps:$4 sm:$0xff]  }
 0x114   : > { %v968_v22 = vsel %vm928_vm4, %v916_v17, 0.0  ;;  %v917_v23 = vmax.f32 %v853_v19, 0.0  ;;  %v4964_v17 = vld [vmem:[%s7083_s7 + $0x14] ss:$8 sps:$4 sm:$0xff]   ;;  %v5552_v19 = vmov 0  }
 0x115   : > { %v969_v24 = vadd.f32 %v968_v22, %v967_v20  ;;  %v974_v36 = vsel %vm928_vm4, %v919_v25, 0.0  ;;  %v4967_v20 = vld [vmem:[%s7083_s7 + $0x24] ss:$8 sps:$4 sm:$0xff]  }
 0x116   : > { %v970_v26 = vsel %vm928_vm4, %v917_v23, 0.0  ;;  %v4914_v27 = vpop.f32.mrb[24].mxu0  ;;  %v4977_v22 = vld [vmem:[%s7085_s9 + $0x4] ss:$20 sps:$4 sm:$0xff]   ;;  %v4983_v25 = vld [vmem:[%s7085_s9 + $0x2c] ss:$20 sps:$4 sm:$0xff]  }
 0x117   : > { %v971_v28 = vadd.f32 %v970_v26, %v969_v24  ;;  %v865_v29 = vpop.f32.mrb[25].mxu0  ;;  %v874_v31 = vadd.f32 %v4914_v27, %v5751_v39  ;;  %v4968_v23 = vld [vmem:[%s5704_s28] sm:$0xff]   ;;  %v4981_v26 = vld [vmem:[%s7085_s9 + $0x28] ss:$20 sps:$4 sm:$0xff]  }
 0x118   : > { %v866_v32 = vadd.f32 %v5751_v39, %v865_v29  ;;  %v4915_v33 = vpop.f32.mrb[26].mxu0  ;;  %v4975_v24 = vld [vmem:[%s7085_s9] ss:$20 sps:$4 sm:$0xff]   ;;  %v4992_v29 = vld [vmem:[%s7085_s9 + $0x7c] ss:$20 sps:$4 sm:$0xff]  }
 0x119   : > { %v973_v34 = vadd.f32 %v972_v30, %v971_v28  ;;  %v868_v35 = vpop.f32.mrb[27].mxu0  ;;  %v877_v38 = vadd.f32 %v4915_v33, %v5751_v39  ;;  %v922_v42 = vmax.f32 %v874_v31, 0.0  ;;  %v4989_v27 = vld [vmem:[%s7085_s9 + $0x54] ss:$20 sps:$4 sm:$0xff]   ;;  %v4987_v28 = vld [vmem:[%s7085_s9 + $0x50] ss:$20 sps:$4 sm:$0xff]  }
 0x11a   : > { %v920_v37 = vmax.f32 %v866_v32, 0.0  ;;  %v869_v40 = vadd.f32 %v5751_v39, %v868_v35  ;;  %v4990_v30 = vld [vmem:[%s7085_s9 + $0x78] ss:$20 sps:$4 sm:$0xff]   ;;  %v4996_v32 = vld [vmem:[%s7085_s9 + $0xa0] ss:$20 sps:$4 sm:$0xff]  }
 0x11b   : > { %v975_v41 = vadd.f32 %v974_v36, %v973_v34  ;;  %v923_v46 = vmax.f32 %v877_v38, 0.0  ;;  %v980_v51 = vsel %vm928_vm4, %v922_v42, 0.0  ;;  %v4998_v31 = vld [vmem:[%s7085_s9 + $0xa4] ss:$20 sps:$4 sm:$0xff]   ;;  %v5004_v33 = vld [vmem:[%s7085_s9 + $0xcc] ss:$20 sps:$4 sm:$0xff]  }
 0x11c   : > { %v976_v43 = vsel %vm928_vm4, %v920_v37, 0.0  ;;  %v921_v44 = vmax.f32 %v869_v40, 0.0  ;;  %v5002_v34 = vld [vmem:[%s7085_s9 + $0xc8] ss:$20 sps:$4 sm:$0xff]   ;;  %v5008_v36 = vld [vmem:[%s7085_s9 + $0xf0] ss:$20 sps:$4 sm:$0xff]  }
 0x11d   : > { %v977_v45 = vadd.f32 %v976_v43, %v975_v41  ;;  %v982_v57 = vsel %vm928_vm4, %v923_v46, 0.0  ;;  %v5010_v35 = vld [vmem:[%s7085_s9 + $0xf4] ss:$20 sps:$4 sm:$0xff]   ;;  %v5013_v37 = vld [vmem:[%s7085_s9 + $0x11c] ss:$20 sps:$4 sm:$0xff]  }
 0x11e   : > { %v978_v47 = vsel %vm928_vm4, %v921_v44, 0.0  ;;  %v4918_v48 = vpop.f32.mrb[28].mxu0  ;;  %v5011_v38 = vld [vmem:[%s7085_s9 + $0x118] ss:$20 sps:$4 sm:$0xff]   ;;  %v5014_v41 = vld [vmem:[%s7085_s9 + $0x120] ss:$20 sps:$4 sm:$0xff]  }
 0x11f   : > { %v979_v49 = vadd.f32 %v978_v47, %v977_v45  ;;  %v881_v50 = vpop.f32.mrb[29].mxu0  ;;  %v890_v52 = vadd.f32 %v4918_v48, %v5751_v39  ;;  %v5016_v40 = vld [vmem:[%s7085_s9 + $0x124] ss:$20 sps:$4 sm:$0xff]   ;;  %v5017_v42 = vld [vmem:[%s7085_s9 + $0x140] ss:$20 sps:$4 sm:$0xff]  }
 0x120   : > { %v882_v53 = vadd.f32 %v5751_v39, %v881_v50  ;;  %v4919_v54 = vpop.f32.mrb[30].mxu0  ;;  %1609 = vmatprep.subr.bf16.mxu0 %v5016_v40  ;;  %v5019_v43 = vld [vmem:[%s7085_s9 + $0x144] ss:$20 sps:$4 sm:$0xff]   ;;  %v5020_v44 = vld [vmem:[%s7085_s9 + $0x148] ss:$20 sps:$4 sm:$0xff]  }
 0x121   : > { %v981_v55 = vadd.f32 %v980_v51, %v979_v49  ;;  %v884_v56 = vpop.f32.mrb[31].mxu0  ;;  %v893_v59 = vadd.f32 %v4919_v54, %v5751_v39  ;;  %v926_v62 = vmax.f32 %v890_v52, 0.0  ;;  %1610 = vmatpush1.bf16.msra.mxu0 %v5014_v41  ;;  %v5022_v45 = vld [vmem:[%s7085_s9 + $0x14c] ss:$20 sps:$4 sm:$0xff]   ;;  %v5028_v47 = vld [vmem:[%s7085_s9 + $0x174] ss:$20 sps:$4 sm:$0xff]  }
 0x122   : > { %v924_v58 = vmax.f32 %v882_v53, 0.0  ;;  %v885_v60 = vadd.f32 %v5751_v39, %v884_v56  ;;  %v5025_v46 = vld [vmem:[%s7085_s9 + $0x16c] ss:$20 sps:$4 sm:$0xff]   ;;  %1611 = vmatprep.subr.bf16.mxu0 %v5022_v45  ;;  %v5023_v48 = vld [vmem:[%s7085_s9 + $0x168] ss:$20 sps:$4 sm:$0xff]  }
 0x123   : > { %v983_v61 = vadd.f32 %v982_v57, %v981_v55  ;;  %v927_v2 = vmax.f32 %v893_v59, 0.0  ;;  %v988_v5 = vsel %vm928_vm4, %v926_v62, 0.0  ;;  %v5026_v49 = vld [vmem:[%s7085_s9 + $0x170] ss:$20 sps:$4 sm:$0xff]   ;;  %v5031_v50 = vld [vmem:[%s7085_s9 + $0x194] ss:$20 sps:$4 sm:$0xff]  }
 0x124   : > { %v984_v63 = vsel %vm928_vm4, %v924_v58, 0.0  ;;  %v925_v0 = vmax.f32 %v885_v60, 0.0  ;;  %v5029_v51 = vld [vmem:[%s7085_s9 + $0x190] ss:$20 sps:$4 sm:$0xff]   ;;  %v5032_v53 = vld [vmem:[%s7085_s9 + $0x198] ss:$20 sps:$4 sm:$0xff]   ;;  %v1062_v58 = vlaneseq }
 0x125   : > { %v985_v1 = vadd.f32 %v984_v63, %v983_v61  ;;  %v990_v7 = vsel %vm928_vm4, %v927_v2, 0.0  ;;  %1612 = vmatpush1.bf16.msra.mxu0 %v5020_v44  ;;  %v5034_v52 = vld [vmem:[%s7085_s9 + $0x19c] ss:$20 sps:$4 sm:$0xff]   ;;  %v5035_v55 = vld [vmem:[%s7085_s9 + $0x1b8] ss:$20 sps:$4 sm:$0xff]  }
 0x126   : > { %v986_v3 = vsel %vm928_vm4, %v925_v0, 0.0  ;;  %1613 = vmatprep.subr.bf16.mxu0 %v5028_v47  ;;  %v5037_v54 = vld [vmem:[%s7085_s9 + $0x1bc] ss:$20 sps:$4 sm:$0xff]   ;;  %v5040_v56 = vld [vmem:[%s7085_s9 + $0x1c4] ss:$20 sps:$4 sm:$0xff]   ;;  %v5941_v62 = vshrl.u32 %v1062_v58, 7 }
 0x127   : > { %v987_v4 = vadd.f32 %v986_v3, %v985_v1  ;;  %v5038_v57 = vld [vmem:[%s7085_s9 + $0x1c0] ss:$20 sps:$4 sm:$0xff]   ;;  %vm4349_vm7 = vcmp.lt.s32.totalorder %v1062_v58, 512 }
 0x128   : > { %v5944_v0 = vsub.s32 1, %v5941_v62  ;;  %v1060_v1 = vld [vmem:[%s7084_s8] sm:$0x3]  ;;  %v5950_v2 = vsub.s32 0, %v5941_v62 }
 0x129   : > { %v989_v6 = vadd.f32 %v988_v5, %v987_v4  ;;  %1614 = vmatpush1.bf16.msra.mxu0 %v5026_v49 }
 0x12a   : > { %1615 = vmatprep.subr.bf16.mxu0 %v5034_v52  ;;  %v1069_v3 = vrot.slane %v1060_v1, %v5944_v0  ;;  %v1065_v4 = vrot.slane %v1060_v1, %v5950_v2 }
 0x12b   : > { %v991_v8 = vadd.f32 %v990_v7, %v989_v6 }
 0x12d   : > { %v992_v9 = vrot.slane %v991_v8, 4  ;;  %1616 = vmatpush1.bf16.msra.mxu0 %v5032_v53 }
 0x12e   : > { %1617 = vmatprep.subr.bf16.mxu0 %v5040_v56 }
 0x12f   : > { %v993_v10 = vadd.f32 %v992_v9, %v991_v8  ;;  %v1156_v9 = vld [vmem:[%s7078_s2 + $0x10] sm:$0xff] }
 0x131   : > { %v994_v11 = vrot.slane %v993_v10, 2  ;;  %1618 = vmatpush1.bf16.msra.mxu0 %v5038_v57 }
 0x133   : > { %v995_v39 = vadd.f32 %v994_v11, %v993_v10  ;;  %v1155_v11 = vld [vmem:[%s7078_s2 + $0x8] sm:$0xff] }
 0x135   : > { %v996_v12 = vrot.slane %v995_v39, 1 }
 0x137   : > { %v997_v13 = vadd.f32 %v996_v12, %v995_v39 }
 0x139   : > { %v998_v14 = vmul.f32 0.00390625, %v997_v13  ;;  %v1157_v13 = vld [vmem:[%s7078_s2 + $0x18] sm:$0xff] }
 0x13b   : > { %v999_v16 = vpack.c.bf16 %v998_v14, %v998_v14  ;;  %v1154_v14 = vld [vmem:[%s7078_s2] sm:$0xff] }
 0x13d   : > { %4923 = vmatmul.mubr.msk.bf16.vlgmr.msra.gmra.mrb[0].mxu1 %vm928_vm4, %v999_v16 }
 0x13e   : > { %1112 = vmatpush1.bf16.msra.mxu1 %v4959_v15  ;;  %1143 = vmatprep.mubr.bf16.mxu1 %v5552_v19 }
 0x13f   : > { %1113 = vmatprep.subr.bf16.mxu1 %v4964_v17 }
 0x142   : > { %1114 = vmatpush1.bf16.msra.mxu1 %v4962_v18 }
 0x143   : > { %1115 = vmatprep.subr.bf16.mxu1 %v4967_v20 }
 0x146   : > { %1116 = vmatpush1.bf16.msra.mxu1 %v4965_v21 }
 0x147   : > { %1552 = vmatprep.subr.bf16.mxu1 %v4977_v22  ;;  %v5041_v22 = vld [vmem:[%s7085_s9 + $0x10] ss:$20 sps:$4 sm:$0xff]  }
 0x149   : > { %4471 = vmatmul.mubr.msk.bf16.vlgmr.msra.gmra.mrb[4].mxu1 %vm1107_vm5, %v4968_v23 }
 0x14a   : > { %1553 = vmatpush1.bf16.msra.mxu1 %v4975_v24  ;;  %v5042_v24 = vld [vmem:[%s7085_s9 + $0x38] ss:$20 sps:$4 sm:$0xff]  }
 0x14b   : > { %1554 = vmatprep.subr.bf16.mxu1 %v4983_v25  ;;  %v5043_v25 = vld [vmem:[%s7085_s9 + $0x60] ss:$20 sps:$4 sm:$0xff]  }
 0x14e   : > { %1555 = vmatpush1.bf16.msra.mxu1 %v4981_v26  ;;  %v5044_v26 = vld [vmem:[%s7085_s9 + $0x88] ss:$20 sps:$4 sm:$0xff]  }
 0x14f   : > { %1556 = vmatprep.subr.bf16.mxu1 %v4989_v27  ;;  %v5045_v27 = vld [vmem:[%s7085_s9 + $0xb0] ss:$20 sps:$4 sm:$0xff]  }
 0x152   : > { %1557 = vmatpush1.bf16.msra.mxu1 %v4987_v28  ;;  %v5046_v28 = vld [vmem:[%s7085_s9 + $0xd8] ss:$20 sps:$4 sm:$0xff]  }
 0x153   : > { %1558 = vmatprep.subr.bf16.mxu1 %v4992_v29  ;;  %v5047_v29 = vld [vmem:[%s7085_s9 + $0x100] ss:$20 sps:$4 sm:$0xff]  }
 0x156   : > { %1559 = vmatpush1.bf16.msra.mxu1 %v4990_v30  ;;  %v5048_v30 = vld [vmem:[%s7085_s9 + $0x128] ss:$20 sps:$4 sm:$0xff]  }
 0x157   : > { %1560 = vmatprep.subr.bf16.mxu1 %v4998_v31  ;;  %v5049_v31 = vld [vmem:[%s7085_s9 + $0x150] ss:$20 sps:$4 sm:$0xff]  }
 0x15a   : > { %1561 = vmatpush1.bf16.msra.mxu1 %v4996_v32  ;;  %v5050_v32 = vld [vmem:[%s7085_s9 + $0x178] ss:$20 sps:$4 sm:$0xff]  }
 0x15b   : > { %1562 = vmatprep.subr.bf16.mxu1 %v5004_v33  ;;  %v5051_v33 = vld [vmem:[%s7085_s9 + $0x1a0] ss:$20 sps:$4 sm:$0xff]  }
 0x15e   : > { %1563 = vmatpush1.bf16.msra.mxu1 %v5002_v34  ;;  %v5052_v34 = vld [vmem:[%s7085_s9 + $0x1c8] ss:$20 sps:$4 sm:$0xff]  }
 0x15f   : > { %1564 = vmatprep.subr.bf16.mxu1 %v5010_v35 }
 0x162   : > { %1565 = vmatpush1.bf16.msra.mxu1 %v5008_v36 }
 0x163   : > { %1566 = vmatprep.subr.bf16.mxu1 %v5013_v37 }
 0x166   : > { %1567 = vmatpush1.bf16.msra.mxu1 %v5011_v38 }
 0x167   : > { %1568 = vmatprep.subr.bf16.mxu1 %v5019_v43 }
 0x16a   : > { %1569 = vmatpush1.bf16.msra.mxu1 %v5017_v42 }
 0x16b   : > { %1570 = vmatprep.subr.bf16.mxu1 %v5025_v46 }
 0x16e   : > { %1571 = vmatpush1.bf16.msra.mxu1 %v5023_v48 }
 0x16f   : > { %1572 = vmatprep.subr.bf16.mxu1 %v5031_v50 }
 0x172   : > { %1573 = vmatpush1.bf16.msra.mxu1 %v5029_v51 }
 0x173   : > { %1574 = vmatprep.subr.bf16.mxu1 %v5037_v54 }
 0x176   : > { %1575 = vmatpush1.bf16.msra.mxu1 %v5035_v55 }
 0x177   : > { %1638 = vmatprep.subr.bf16.mxu1 %v5552_v19 }
 0x210   : > { %v5938_v59 = vpop.f32.mrb[0].mxu1 }
 0x211   : > { %v4924_v60 = vpop.f32.mrb[1].mxu1 }
 0x212   : > { %v1049_v61 = vpop.f32.mrb[2].mxu1 }
 0x213   : > { %v4925_v63 = vpop.f32.mrb[3].mxu1 }
 0x21c   : > { %v1145_v5 = vpop.f32.mrb[4].mxu1 }
 0x21d   : > { %v1147_v6 = vpop.f32.mrb[5].mxu1  ;;  %v1146_v10 = vadd.f32 %v1145_v5, %v1065_v4 }
 0x21e   : > { %v1148_v7 = vadd.f32 %v1147_v6, %v1069_v3  ;;  %v1149_v8 = vpop.f32.mrb[6].mxu1 }
 0x21f   : > { %v1150_v39 = vadd.f32 %v1149_v8, %v1065_v4  ;;  %v1151_v12 = vpop.f32.mrb[7].mxu1  ;;  %v5972_v20 = vadd.f32 %v1154_v14, %v1146_v10  ;;  %v5055_v14 = vld [vmem:[%s7086_s10 + $0x4] ss:$8 sps:$4 sm:$0xff]  }
 0x220   : > { %v1152_v15 = vadd.f32 %v1151_v12, %v1069_v3  ;;  %v5968_v17 = vadd.f32 %v1155_v11, %v1148_v7 }
 0x221   : > { %v5966_v16 = vadd.f32 %v1156_v9, %v1150_v39 }
 0x222   : > { %v5970_v18 = vadd.f32 %v1157_v13, %v1152_v15 }
 0x223   : > { %v1162_v23 = vpack.c.bf16 %v5966_v16, %v5972_v20 }
 0x224   : > { %v1163_v21 = vpack.c.bf16 %v5970_v18, %v5968_v17 }
 0x226   : > { %4532 = vmatprep.mubr.msk.bf16.mxu1 %vm1548_vm6, %v1163_v21  ;;  %4533 = vmatprep.mubr.msk.bf16.mxu0 %vm1548_vm6, %v1163_v21 }
 0x227   : > { %1585 = vmatmul.mubr.bf16.vlgmr.msra.gmra.mrb[8].mxu1 %v1162_v23  ;;  %1628 = vmatmul.mubr.bf16.vlgmr.msra.gmra.mrb[32].mxu0 %v1162_v23 }
 0x228   : > { %1639 = vmatpush1.bf16.msra.mxu1 %v5041_v22  ;;  %4534 = vmatprep.mubr.msk.bf16.mxu1 %vm1548_vm6, %v1163_v21 }
 0x229   : > { %1640 = vmatprep.subr.bf16.mxu1 %v5552_v19 }
 0x22c   : > { %1641 = vmatpush1.bf16.msra.mxu1 %v5042_v24 }
 0x22d   : > { %1642 = vmatprep.subr.bf16.mxu1 %v5552_v19 }
 0x230   : > { %1643 = vmatpush1.bf16.msra.mxu1 %v5043_v25 }
 0x231   : > { %1644 = vmatprep.subr.bf16.mxu1 %v5552_v19 }
 0x234   : > { %1645 = vmatpush1.bf16.msra.mxu1 %v5044_v26  ;;  %v5053_v26 = vld [vmem:[%s7086_s10] ss:$8 sps:$4 sm:$0xff]  }
 0x235   : > { %1646 = vmatprep.subr.bf16.mxu1 %v5552_v19 }
 0x238   : > { %1647 = vmatpush1.bf16.msra.mxu1 %v5045_v27 }
 0x239   : > { %1648 = vmatprep.subr.bf16.mxu1 %v5552_v19 }
 0x23c   : > { %1649 = vmatpush1.bf16.msra.mxu1 %v5046_v28  ;;  %v5058_v28 = vld [vmem:[%s7086_s10 + $0x14] ss:$8 sps:$4 sm:$0xff]  }
 0x23d   : > { %1650 = vmatprep.subr.bf16.mxu1 %v5552_v19 }
 0x240   : > { %1651 = vmatpush1.bf16.msra.mxu1 %v5047_v29  ;;  %v5056_v29 = vld [vmem:[%s7086_s10 + $0x10] ss:$8 sps:$4 sm:$0xff]  }
 0x241   : > { %1652 = vmatprep.subr.bf16.mxu1 %v5552_v19 }
 0x244   : > { %1653 = vmatpush1.bf16.msra.mxu1 %v5048_v30  ;;  %v5061_v30 = vld [vmem:[%s7086_s10 + $0x24] ss:$8 sps:$4 sm:$0xff]  }
 0x245   : > { %1654 = vmatprep.subr.bf16.mxu1 %v5552_v19 }
 0x248   : > { %1655 = vmatpush1.bf16.msra.mxu1 %v5049_v31  ;;  %v5059_v31 = vld [vmem:[%s7086_s10 + $0x20] ss:$8 sps:$4 sm:$0xff]  }
 0x249   : > { %1656 = vmatprep.subr.bf16.mxu1 %v5552_v19 }
 0x24c   : > { %1657 = vmatpush1.bf16.msra.mxu1 %v5050_v32  ;;  %v5064_v32 = vld [vmem:[%s7086_s10 + $0x34] ss:$8 sps:$4 sm:$0xff]  }
 0x24d   : > { %1658 = vmatprep.subr.bf16.mxu1 %v5552_v19 }
 0x250   : > { %1659 = vmatpush1.bf16.msra.mxu1 %v5051_v33  ;;  %v5062_v33 = vld [vmem:[%s7086_s10 + $0x30] ss:$8 sps:$4 sm:$0xff]  }
 0x251   : > { %1660 = vmatprep.subr.bf16.mxu1 %v5552_v19 }
 0x254   : > { %1661 = vmatpush1.bf16.msra.mxu1 %v5052_v34  ;;  %v5067_v34 = vld [vmem:[%s7086_s10 + $0x44] ss:$8 sps:$4 sm:$0xff]  }
 0x257   : > { %1671 = vmatmul.mubr.bf16.vlgmr.msra.gmra.mrb[12].mxu1 %v1162_v23 }
 0x2fa   : > { %v1586_v35 = vpop.f32.mrb[8].mxu1  ;;  %v1629_v36 = vpop.f32.mrb[32].mxu0 }
 0x2fb   : > { %v1588_v37 = vpop.f32.mrb[9].mxu1  ;;  %v1631_v38 = vpop.f32.mrb[33].mxu0 }
 0x2fc   : > { %v1590_v40 = vpop.f32.mrb[10].mxu1  ;;  %v1633_v41 = vpop.f32.mrb[34].mxu0 }
 0x2fd   : > { %v1679_v42 = vpack.c.bf16 %v1590_v40, %v1586_v35  ;;  %v1681_v43 = vpack.c.bf16 %v1633_v41, %v1629_v36  ;;  %v1592_v44 = vpop.f32.mrb[11].mxu1  ;;  %v1635_v45 = vpop.f32.mrb[35].mxu0  ;;  %v5065_v35 = vld [vmem:[%s7086_s10 + $0x40] ss:$8 sps:$4 sm:$0xff]   ;;  %v5070_v36 = vld [vmem:[%s7086_s10 + $0x54] ss:$8 sps:$4 sm:$0xff]  }
 0x2fe   : > { %v1680_v46 = vpack.c.bf16 %v1592_v44, %v1588_v37  ;;  %v1763_v47 = vpack.c.bf16 %v1635_v45, %v1631_v38  ;;  %v5068_v37 = vld [vmem:[%s7086_s10 + $0x50] ss:$8 sps:$4 sm:$0xff]   ;;  %v5073_v38 = vld [vmem:[%s7086_s10 + $0x64] ss:$8 sps:$4 sm:$0xff]   ;;  %v5071_v40 = vld [vmem:[%s7086_s10 + $0x60] ss:$8 sps:$4 sm:$0xff]  }
 0x2ff   : > { %v5076_v41 = vld [vmem:[%s7086_s10 + $0x74] ss:$8 sps:$4 sm:$0xff]   ;;  %v5077_v44 = vld [vmem:[%s7086_s10 + $0x80] ss:$8 sps:$4 sm:$0xff]  }
 0x300   : > { %1684 = vrot.lane.b32.xlu0 %v1680_v46, %s5553_s0  ;;  %4536 = vmatprep.mubr.msk.bf16.mxu0 %vm1548_vm6, %v1680_v46  ;;  %v5082_v45 = vld [vmem:[%s7086_s10 + $0x94] ss:$8 sps:$4 sm:$0xff]   ;;  %v5080_v46 = vld [vmem:[%s7086_s10 + $0x90] ss:$8 sps:$4 sm:$0xff]  }
 0x304   : > { %1686 = vrot.lane.b32.xlu0 %v1681_v43, %s5553_s0  ;;  %v5079_v43 = vld [vmem:[%s7086_s10 + $0x84] ss:$8 sps:$4 sm:$0xff]   ;;  %s543_s0 = scalar_lea.vmem %s7092_s16, %s4426_s29 }
 0x32a   : > { %v1672_v48 = vpop.f32.mrb[12].mxu1 }
 0x32b   : > { %v1674_v49 = vpop.f32.mrb[13].mxu1 }
 0x32c   : > { %v1675_v50 = vpop.f32.mrb[14].mxu1  ;;  %v5088_v49 = vld [vmem:[%s7086_s10 + $0xb4] ss:$8 sps:$4 sm:$0xff]  }
 0x32d   : > { %v1764_v51 = vpack.c.bf16 %v1675_v50, %v1672_v48  ;;  %v1677_v52 = vpop.f32.mrb[15].mxu1  ;;  %v5083_v48 = vld [vmem:[%s7086_s10 + $0xa0] ss:$8 sps:$4 sm:$0xff]   ;;  %v5086_v50 = vld [vmem:[%s7086_s10 + $0xb0] ss:$8 sps:$4 sm:$0xff]  }
 0x32e   : > { %v5091_v52 = vld [vmem:[%s7087_s11 + $0x4] ss:$24 sps:$4 sm:$0xff]  }
 0x32f   : > { %2490 = vmatprep.subr.bf16.mxu1 %v5091_v52  ;;  %v5199_v52 = vld [vmem:[%s7090_s14 + $0x4] ss:$16 sps:$4 sm:$0xff]  }
 0x372   : > { %v1685_v53 = vpop.permute.xlu0 %1684 }
 0x376   : > { %v1687_v54 = vpop.permute.xlu0 %1686 }
 0x377   : > { %v1689_v55 = vsel %vm1548_vm6, %v1685_v53, %v1687_v54  ;;  %4535 = vmatprep.subr.msk.bf16.mxu0 %vm1548_vm6, %v1687_v54  ;;  %v5094_v53 = vld [vmem:[%s7087_s11 + $0xc] ss:$24 sps:$4 sm:$0xff]  }
 0x378   : > { %1698 = vmatpush1.bf16.xpose.msra.mxu0 %v1689_v55  ;;  %v5097_v54 = vld [vmem:[%s7087_s11 + $0x34] ss:$24 sps:$4 sm:$0xff]   ;;  %v5095_v55 = vld [vmem:[%s7087_s11 + $0x30] ss:$24 sps:$4 sm:$0xff]  }
 0x379   : > { %1768 = vmatprep.subr.bf16.mxu0 %v1764_v51  ;;  %v5089_v51 = vld [vmem:[%s7087_s11] ss:$24 sps:$4 sm:$0xff]  }
 0x37a   : > { %2491 = vmatpush1.bf16.msra.mxu1 %v5089_v51  ;;  %v5163_v51 = vld [vmem:[%s7087_s11 + $0x14] ss:$24 sps:$4 sm:$0xff]  }
 0x37b   : > { %2492 = vmatprep.subr.bf16.mxu1 %v5097_v54 }
 0x37e   : > { %2493 = vmatpush1.bf16.msra.mxu1 %v5095_v55 }
 0x37f   : > { %1730 = vmatmul.mubr.bf16.vlgmr.msra.gmra.mrb[36].mxu0 %v1679_v42  ;;  %v5074_v42 = vld [vmem:[%s7086_s10 + $0x70] ss:$8 sps:$4 sm:$0xff]  }
 0x380   : > { %1769 = vmatpush1.bf16.msra.mxu0 %v1763_v47  ;;  %1800 = vmatprep.mubr.bf16.mxu0 %v5552_v19  ;;  %v5085_v47 = vld [vmem:[%s7086_s10 + $0xa4] ss:$8 sps:$4 sm:$0xff]  }
 0x381   : > { %1960 = vmatprep.subr.bf16.mxu0 %v5055_v14  ;;  %v5104_v14 = vld [vmem:[%s7087_s11 + $0x68] ss:$24 sps:$4 sm:$0xff]  }
 0x452   : > { %v1731_v56 = vpop.f32.mrb[36].mxu0 }
 0x453   : > { %v1738_v57 = vmul.f32 0.07216878, %v1731_v56  ;;  %v1733_v60 = vpop.f32.mrb[37].mxu0  ;;  %v5103_v56 = vld [vmem:[%s7087_s11 + $0x64] ss:$24 sps:$4 sm:$0xff]  }
 0x454   : > { %v1734_v61 = vpop.f32.mrb[38].mxu0  ;;  %2494 = vmatprep.subr.bf16.mxu1 %v5103_v56  ;;  %v5109_v60 = vld [vmem:[%s7087_s11 + $0x94] ss:$24 sps:$4 sm:$0xff]  }
 0x455   : > { %v1739_v63 = vmul.f32 0.07216878, %v1734_v61  ;;  %v1736_v1 = vpop.f32.mrb[39].mxu0  ;;  %v1740_v3 = vsel %vm928_vm4, %v1738_v57, -inf  ;;  %v5107_v61 = vld [vmem:[%s7087_s11 + $0x90] ss:$24 sps:$4 sm:$0xff]  }
 0x456   : > { %1741 = vmax.xlane.f32.xlu1 %v1740_v3  ;;  %v5113_v1 = vld [vmem:[%s7087_s11 + $0xc0] ss:$24 sps:$4 sm:$0xff]   ;;  %v5121_v3 = vld [vmem:[%s7087_s11 + $0xf4] ss:$24 sps:$4 sm:$0xff]  }
 0x457   : > { %v1743_v4 = vsel %vm928_vm4, %v1739_v63, -inf }
 0x45a   : > { %1744 = vmax.xlane.f32.xlu1 %v1743_v4  ;;  %v5119_v4 = vld [vmem:[%s7087_s11 + $0xf0] ss:$24 sps:$4 sm:$0xff]  }
 0x4e3   : > { %v1742_v5 = vpop.xlane.xlu1 %1741 }
 0x4e4   : > { %v1746_v6 = vsub.f32 %v1738_v57, %v1742_v5  ;;  %v5101_v57 = vld [vmem:[%s7087_s11 + $0x60] ss:$24 sps:$4 sm:$0xff]  }
 0x4e5   : > { %2495 = vmatpush1.bf16.msra.mxu1 %v5101_v57 }
 0x4e6   : > { %v1748_v7 = vmul.f32 1.442695, %v1746_v6  ;;  %2496 = vmatprep.subr.bf16.mxu1 %v5109_v60 }
 0x4e7   : > { %v1745_v8 = vpop.xlane.xlu1 %1744 }
 0x4e8   : > { %5533 = vpow2.f32 %v1748_v7  ;;  %v1747_v9 = vsub.f32 %v1739_v63, %v1745_v8  ;;  %v5115_v63 = vld [vmem:[%s7087_s11 + $0xc4] ss:$24 sps:$4 sm:$0xff]  }
 0x4e9   : > { %2497 = vmatpush1.bf16.msra.mxu1 %v5107_v61 }
 0x4ea   : > { %v1750_v10 = vmul.f32 1.442695, %v1747_v9  ;;  %2498 = vmatprep.subr.bf16.mxu1 %v5115_v63 }
 0x4ec   : > { %5535 = vpow2.f32 %v1750_v10 }
 0x4ed   : > { %2499 = vmatpush1.bf16.msra.mxu1 %v5113_v1 }
 0x4ee   : > { %2500 = vmatprep.subr.bf16.mxu1 %v5121_v3 }
 0x4f1   : > { %2501 = vmatpush1.bf16.msra.mxu1 %v5119_v4 }
 0x4f2   : > { %v5534_v11 = vpop.eup %5533 }
 0x4f3   : > { %v1752_v39 = vsel %vm928_vm4, %v5534_v11, 0.0 }
 0x4f4   : > { %1753 = vadd.xlane.f32.xlu0 %v1752_v39  ;;  %v5100_v39 = vld [vmem:[%s7087_s11 + $0x3c] ss:$24 sps:$4 sm:$0xff]  }
 0x4f6   : > { %v5536_v12 = vpop.eup %5535 }
 0x4f7   : > { %v1755_v13 = vsel %vm928_vm4, %v5536_v12, 0.0 }
 0x4f8   : > { %1756 = vadd.xlane.f32.xlu1 %v1755_v13  ;;  %v5106_v13 = vld [vmem:[%s7087_s11 + $0x6c] ss:$24 sps:$4 sm:$0xff]  }
 0x581   : > { %v1754_v15 = vpop.xlane.xlu0 %1753 }
 0x582   : > { %5537 = vrcp.f32 %v1754_v15  ;;  %v5112_v15 = vld [vmem:[%s7087_s11 + $0x9c] ss:$24 sps:$4 sm:$0xff]  }
 0x585   : > { %v1757_v21 = vpop.xlane.xlu1 %1756 }
 0x586   : > { %5539 = vrcp.f32 %v1757_v21  ;;  %v5110_v21 = vld [vmem:[%s7087_s11 + $0x98] ss:$24 sps:$4 sm:$0xff]  }
 0x58c   : > { %v5538_v22 = vpop.eup %5537 }
 0x58d   : > { %v1760_v24 = vmul.f32 %v5538_v22, %v5534_v11  ;;  %v5092_v11 = vld [vmem:[%s7087_s11 + $0x8] ss:$24 sps:$4 sm:$0xff]   ;;  %v5118_v22 = vld [vmem:[%s7087_s11 + $0xcc] ss:$24 sps:$4 sm:$0xff]  }
 0x590   : > { %v5540_v23 = vpop.eup %5539 }
 0x591   : > { %v1761_v25 = vmul.f32 %v5540_v23, %v5536_v12  ;;  %v5098_v12 = vld [vmem:[%s7087_s11 + $0x38] ss:$24 sps:$4 sm:$0xff]   ;;  %v5116_v23 = vld [vmem:[%s7087_s11 + $0xc8] ss:$24 sps:$4 sm:$0xff]  }
 0x593   : > { %v1762_v27 = vpack.c.bf16 %v1761_v25, %v1760_v24  ;;  %v5124_v24 = vld [vmem:[%s7087_s11 + $0xfc] ss:$24 sps:$4 sm:$0xff]   ;;  %v5122_v25 = vld [vmem:[%s7087_s11 + $0xf8] ss:$24 sps:$4 sm:$0xff]  }
 0x595   : > { %4537 = vmatmul.mubr.msk.bf16.vlgmr.msra.gmra.mrb[40].mxu0 %vm928_vm4, %v1762_v27  ;;  %v5125_v27 = vld [vmem:[%s7087_s11 + $0x120] ss:$24 sps:$4 sm:$0xff]  }
 0x596   : > { %1961 = vmatpush1.bf16.msra.mxu0 %v5053_v26  ;;  %v5127_v26 = vld [vmem:[%s7087_s11 + $0x124] ss:$24 sps:$4 sm:$0xff]  }
 0x597   : > { %1962 = vmatprep.subr.bf16.mxu0 %v5058_v28  ;;  %v5130_v28 = vld [vmem:[%s7087_s11 + $0x12c] ss:$24 sps:$4 sm:$0xff]   ;;  %2502 = vmatprep.subr.bf16.mxu1 %v5127_v26  ;;  %v5164_v26 = vld [vmem:[%s7087_s11 + $0x40] ss:$24 sps:$4 sm:$0xff]  }
 0x598   : > { %2503 = vmatpush1.bf16.msra.mxu1 %v5125_v27  ;;  %v5169_v27 = vld [vmem:[%s7087_s11 + $0x74] ss:$24 sps:$4 sm:$0xff]  }
 0x59a   : > { %1963 = vmatpush1.bf16.msra.mxu0 %v5056_v29  ;;  %v5128_v29 = vld [vmem:[%s7087_s11 + $0x128] ss:$24 sps:$4 sm:$0xff]  }
 0x59b   : > { %1964 = vmatprep.subr.bf16.mxu0 %v5061_v30  ;;  %v5133_v30 = vld [vmem:[%s7087_s11 + $0x154] ss:$24 sps:$4 sm:$0xff]  }
 0x59c   : > { %2504 = vmatprep.subr.bf16.mxu1 %v5133_v30  ;;  %v5167_v30 = vld [vmem:[%s7087_s11 + $0x70] ss:$24 sps:$4 sm:$0xff]  }
 0x59e   : > { %1965 = vmatpush1.bf16.msra.mxu0 %v5059_v31  ;;  %v5131_v31 = vld [vmem:[%s7087_s11 + $0x150] ss:$24 sps:$4 sm:$0xff]  }
 0x59f   : > { %1966 = vmatprep.subr.bf16.mxu0 %v5064_v32  ;;  %v5136_v32 = vld [vmem:[%s7087_s11 + $0x15c] ss:$24 sps:$4 sm:$0xff]   ;;  %2505 = vmatpush1.bf16.msra.mxu1 %v5131_v31 }
 0x5a0   : > { %v5172_v31 = vld [vmem:[%s7087_s11 + $0xa4] ss:$24 sps:$4 sm:$0xff]  }
 0x5a2   : > { %1967 = vmatpush1.bf16.msra.mxu0 %v5062_v33  ;;  %v5134_v33 = vld [vmem:[%s7087_s11 + $0x158] ss:$24 sps:$4 sm:$0xff]  }
 0x5a3   : > { %1968 = vmatprep.subr.bf16.mxu0 %v5067_v34  ;;  %v5139_v34 = vld [vmem:[%s7087_s11 + $0x184] ss:$24 sps:$4 sm:$0xff]  }
 0x5a4   : > { %2506 = vmatprep.subr.bf16.mxu1 %v5139_v34  ;;  %v5170_v34 = vld [vmem:[%s7087_s11 + $0xa0] ss:$24 sps:$4 sm:$0xff]  }
 0x5a6   : > { %1969 = vmatpush1.bf16.msra.mxu0 %v5065_v35  ;;  %v5137_v35 = vld [vmem:[%s7087_s11 + $0x180] ss:$24 sps:$4 sm:$0xff]  }
 0x5a7   : > { %1970 = vmatprep.subr.bf16.mxu0 %v5070_v36  ;;  %v5142_v36 = vld [vmem:[%s7087_s11 + $0x18c] ss:$24 sps:$4 sm:$0xff]   ;;  %2507 = vmatpush1.bf16.msra.mxu1 %v5137_v35 }
 0x5a8   : > { %v5175_v35 = vld [vmem:[%s7087_s11 + $0xd4] ss:$24 sps:$4 sm:$0xff]  }
 0x5aa   : > { %1971 = vmatpush1.bf16.msra.mxu0 %v5068_v37  ;;  %v5140_v37 = vld [vmem:[%s7087_s11 + $0x188] ss:$24 sps:$4 sm:$0xff]  }
 0x5ab   : > { %1972 = vmatprep.subr.bf16.mxu0 %v5073_v38  ;;  %v5145_v38 = vld [vmem:[%s7087_s11 + $0x1b4] ss:$24 sps:$4 sm:$0xff]  }
 0x5ac   : > { %2508 = vmatprep.subr.bf16.mxu1 %v5145_v38  ;;  %v5173_v38 = vld [vmem:[%s7087_s11 + $0xd0] ss:$24 sps:$4 sm:$0xff]  }
 0x5ae   : > { %1973 = vmatpush1.bf16.msra.mxu0 %v5071_v40  ;;  %v5143_v40 = vld [vmem:[%s7087_s11 + $0x1b0] ss:$24 sps:$4 sm:$0xff]  }
 0x5af   : > { %1974 = vmatprep.subr.bf16.mxu0 %v5076_v41  ;;  %v5148_v41 = vld [vmem:[%s7087_s11 + $0x1bc] ss:$24 sps:$4 sm:$0xff]   ;;  %2509 = vmatpush1.bf16.msra.mxu1 %v5143_v40 }
 0x5b0   : > { %v5178_v40 = vld [vmem:[%s7087_s11 + $0x104] ss:$24 sps:$4 sm:$0xff]  }
 0x5b2   : > { %1975 = vmatpush1.bf16.msra.mxu0 %v5074_v42  ;;  %v5146_v42 = vld [vmem:[%s7087_s11 + $0x1b8] ss:$24 sps:$4 sm:$0xff]  }
 0x5b3   : > { %1976 = vmatprep.subr.bf16.mxu0 %v5079_v43  ;;  %v5151_v43 = vld [vmem:[%s7087_s11 + $0x1e4] ss:$24 sps:$4 sm:$0xff]  }
 0x5b4   : > { %2510 = vmatprep.subr.bf16.mxu1 %v5151_v43  ;;  %v5176_v43 = vld [vmem:[%s7087_s11 + $0x100] ss:$24 sps:$4 sm:$0xff]  }
 0x5b6   : > { %1977 = vmatpush1.bf16.msra.mxu0 %v5077_v44  ;;  %v5149_v44 = vld [vmem:[%s7087_s11 + $0x1e0] ss:$24 sps:$4 sm:$0xff]  }
 0x5b7   : > { %1978 = vmatprep.subr.bf16.mxu0 %v5082_v45  ;;  %v5152_v45 = vld [vmem:[%s7087_s11 + $0x1e8] ss:$24 sps:$4 sm:$0xff]   ;;  %2511 = vmatpush1.bf16.msra.mxu1 %v5149_v44  ;;  %v5181_v44 = vld [vmem:[%s7087_s11 + $0x134] ss:$24 sps:$4 sm:$0xff]  }
 0x5ba   : > { %1979 = vmatpush1.bf16.msra.mxu0 %v5080_v46  ;;  %v5154_v46 = vld [vmem:[%s7087_s11 + $0x1ec] ss:$24 sps:$4 sm:$0xff]  }
 0x5bb   : > { %1980 = vmatprep.subr.bf16.mxu0 %v5085_v47  ;;  %v5157_v47 = vld [vmem:[%s7087_s11 + $0x214] ss:$24 sps:$4 sm:$0xff]  }
 0x5bc   : > { %2512 = vmatprep.subr.bf16.mxu1 %v5157_v47  ;;  %v5179_v47 = vld [vmem:[%s7087_s11 + $0x130] ss:$24 sps:$4 sm:$0xff]  }
 0x5be   : > { %1981 = vmatpush1.bf16.msra.mxu0 %v5083_v48  ;;  %v5155_v48 = vld [vmem:[%s7087_s11 + $0x210] ss:$24 sps:$4 sm:$0xff]  }
 0x5bf   : > { %1982 = vmatprep.subr.bf16.mxu0 %v5088_v49  ;;  %v5160_v49 = vld [vmem:[%s7087_s11 + $0x21c] ss:$24 sps:$4 sm:$0xff]   ;;  %2513 = vmatpush1.bf16.msra.mxu1 %v5155_v48 }
 0x5c0   : > { %2572 = vmatprep.subr.bf16.mxu1 %v5163_v51  ;;  %v5184_v48 = vld [vmem:[%s7087_s11 + $0x164] ss:$24 sps:$4 sm:$0xff]   ;;  %v5182_v51 = vld [vmem:[%s7087_s11 + $0x160] ss:$24 sps:$4 sm:$0xff]  }
 0x5c2   : > { %1983 = vmatpush1.bf16.msra.mxu0 %v5086_v50  ;;  %v5158_v50 = vld [vmem:[%s7087_s11 + $0x218] ss:$24 sps:$4 sm:$0xff]  }
 0x5c3   : > { %2531 = vmatprep.subr.bf16.mxu0 %v5094_v53 }
 0x668   : > { %v1802_v5 = vpop.f32.mrb[40].mxu0 }
 0x669   : > { %v1804_v6 = vpop.f32.mrb[41].mxu0 }
 0x66a   : > { %v1806_v7 = vpop.f32.mrb[42].mxu0 }
 0x66b   : > { %v1811_v8 = vpack.c.bf16 %v1806_v7, %v1802_v5  ;;  %v1808_v9 = vpop.f32.mrb[43].mxu0 }
 0x66c   : > { %v1812_v10 = vpack.c.bf16 %v1808_v9, %v1804_v6 }
 0x66e   : > { %4562 = vmatprep.mubr.msk.bf16.mxu0 %vm1548_vm6, %v1812_v10 }
 0x66f   : > { %1993 = vmatmul.mubr.bf16.vlgmr.msra.gmra.mrb[44].mxu0 %v1811_v8 }
 0x670   : > { %2532 = vmatpush1.bf16.msra.mxu0 %v5092_v11 }
 0x671   : > { %2533 = vmatprep.subr.bf16.mxu0 %v5100_v39 }
 0x674   : > { %2534 = vmatpush1.bf16.msra.mxu0 %v5098_v12 }
 0x675   : > { %2535 = vmatprep.subr.bf16.mxu0 %v5106_v13 }
 0x678   : > { %2536 = vmatpush1.bf16.msra.mxu0 %v5104_v14 }
 0x679   : > { %2537 = vmatprep.subr.bf16.mxu0 %v5112_v15 }
 0x67c   : > { %2538 = vmatpush1.bf16.msra.mxu0 %v5110_v21  ;;  %v5161_v21 = vld [vmem:[%s7087_s11 + $0x10] ss:$24 sps:$4 sm:$0xff]  }
 0x67d   : > { %2539 = vmatprep.subr.bf16.mxu0 %v5118_v22 }
 0x680   : > { %2540 = vmatpush1.bf16.msra.mxu0 %v5116_v23  ;;  %v5166_v23 = vld [vmem:[%s7087_s11 + $0x44] ss:$24 sps:$4 sm:$0xff]  }
 0x681   : > { %2541 = vmatprep.subr.bf16.mxu0 %v5124_v24  ;;  %v5197_v24 = vld [vmem:[%s7090_s14] ss:$16 sps:$4 sm:$0xff]  }
 0x684   : > { %2542 = vmatpush1.bf16.msra.mxu0 %v5122_v25  ;;  %v5205_v25 = vld [vmem:[%s7090_s14 + $0x24] ss:$16 sps:$4 sm:$0xff]  }
 0x685   : > { %2543 = vmatprep.subr.bf16.mxu0 %v5130_v28  ;;  %v5203_v28 = vld [vmem:[%s7090_s14 + $0x20] ss:$16 sps:$4 sm:$0xff]  }
 0x688   : > { %2544 = vmatpush1.bf16.msra.mxu0 %v5128_v29  ;;  %v5211_v29 = vld [vmem:[%s7090_s14 + $0x44] ss:$16 sps:$4 sm:$0xff]  }
 0x689   : > { %2545 = vmatprep.subr.bf16.mxu0 %v5136_v32  ;;  %v5209_v32 = vld [vmem:[%s7090_s14 + $0x40] ss:$16 sps:$4 sm:$0xff]  }
 0x68c   : > { %2546 = vmatpush1.bf16.msra.mxu0 %v5134_v33  ;;  %v5217_v33 = vld [vmem:[%s7090_s14 + $0x64] ss:$16 sps:$4 sm:$0xff]  }
 0x68d   : > { %2547 = vmatprep.subr.bf16.mxu0 %v5142_v36  ;;  %v5215_v36 = vld [vmem:[%s7090_s14 + $0x60] ss:$16 sps:$4 sm:$0xff]  }
 0x690   : > { %2548 = vmatpush1.bf16.msra.mxu0 %v5140_v37  ;;  %v5223_v37 = vld [vmem:[%s7090_s14 + $0x84] ss:$16 sps:$4 sm:$0xff]  }
 0x691   : > { %2549 = vmatprep.subr.bf16.mxu0 %v5148_v41  ;;  %v5221_v41 = vld [vmem:[%s7090_s14 + $0x80] ss:$16 sps:$4 sm:$0xff]  }
 0x694   : > { %2550 = vmatpush1.bf16.msra.mxu0 %v5146_v42  ;;  %v5229_v42 = vld [vmem:[%s7090_s14 + $0xa4] ss:$16 sps:$4 sm:$0xff]  }
 0x695   : > { %2551 = vmatprep.subr.bf16.mxu0 %v5154_v46  ;;  %v5235_v46 = vld [vmem:[%s7090_s14 + $0xc4] ss:$16 sps:$4 sm:$0xff]  }
 0x698   : > { %2552 = vmatpush1.bf16.msra.mxu0 %v5152_v45  ;;  %v5227_v45 = vld [vmem:[%s7090_s14 + $0xa0] ss:$16 sps:$4 sm:$0xff]  }
 0x699   : > { %2553 = vmatprep.subr.bf16.mxu0 %v5160_v49  ;;  %v5233_v49 = vld [vmem:[%s7090_s14 + $0xc0] ss:$16 sps:$4 sm:$0xff]  }
 0x69c   : > { %2554 = vmatpush1.bf16.msra.mxu0 %v5158_v50  ;;  %v5241_v50 = vld [vmem:[%s7090_s14 + $0xe4] ss:$16 sps:$4 sm:$0xff]  }
 0x69d   : > { %3804 = vmatprep.subr.bf16.mxu0 %v5199_v52  ;;  %v5187_v52 = vld [vmem:[%s7087_s11 + $0x194] ss:$24 sps:$4 sm:$0xff]  }
 0x742   : > { %v1994_v53 = vpop.f32.mrb[44].mxu0 }
 0x743   : > { %v1996_v54 = vpop.f32.mrb[45].mxu0  ;;  %v1995_v57 = vadd.f32 %v1994_v53, %v5972_v20  ;;  %v5239_v53 = vld [vmem:[%s7090_s14 + $0xe0] ss:$16 sps:$4 sm:$0xff]  }
 0x744   : > { %v1997_v55 = vadd.f32 %v1996_v54, %v5968_v17  ;;  %v1998_v56 = vpop.f32.mrb[46].mxu0  ;;  %v5247_v54 = vld [vmem:[%s7090_s14 + $0x104] ss:$16 sps:$4 sm:$0xff]  }
 0x745   : > { %v1999_v60 = vadd.f32 %v1998_v56, %v5966_v16  ;;  %v2000_v61 = vpop.f32.mrb[47].mxu0  ;;  %v5190_v56 = vld [vmem:[%s7087_s11 + $0x1c4] ss:$24 sps:$4 sm:$0xff]  }
 0x746   : > { %v2001_v63 = vadd.f32 %v2000_v61, %v5970_v18  ;;  %v2010_v3 = vsel %vm1548_vm6, %v1997_v55, 0.0  ;;  %v5185_v55 = vld [vmem:[%s7087_s11 + $0x190] ss:$24 sps:$4 sm:$0xff]   ;;  %v5188_v61 = vld [vmem:[%s7087_s11 + $0x1c0] ss:$24 sps:$4 sm:$0xff]  }
 0x747   : > { %v2003_v1 = vadd.f32 %v1999_v60, %v1995_v57  ;;  %v5245_v57 = vld [vmem:[%s7090_s14 + $0x100] ss:$16 sps:$4 sm:$0xff]   ;;  %v5253_v60 = vld [vmem:[%s7090_s14 + $0x124] ss:$16 sps:$4 sm:$0xff]  }
 0x748   : > { %v2011_v4 = vsel %vm1548_vm6, %v2001_v63, 0.0  ;;  %v5193_v63 = vld [vmem:[%s7087_s11 + $0x1f4] ss:$24 sps:$4 sm:$0xff]  }
 0x749   : > { %v2004_v5 = vrot.slane %v2003_v1, 4  ;;  %v2012_v6 = vadd.f32 %v2011_v4, %v2010_v3  ;;  %v5259_v3 = vld [vmem:[%s7090_s14 + $0x144] ss:$16 sps:$4 sm:$0xff]   ;;  %v5191_v4 = vld [vmem:[%s7087_s11 + $0x1f0] ss:$24 sps:$4 sm:$0xff]  }
 0x74b   : > { %v2005_v7 = vadd.f32 %v2004_v5, %v2003_v1  ;;  %v2013_v8 = vrot.slane %v2012_v6, 4  ;;  %v5251_v1 = vld [vmem:[%s7090_s14 + $0x120] ss:$16 sps:$4 sm:$0xff]   ;;  %v5196_v5 = vld [vmem:[%s7087_s11 + $0x224] ss:$24 sps:$4 sm:$0xff]  }
 0x74d   : > { %v2006_v9 = vrot.slane %v2005_v7, 2  ;;  %v2014_v10 = vadd.f32 %v2013_v8, %v2012_v6  ;;  %v5257_v6 = vld [vmem:[%s7090_s14 + $0x140] ss:$16 sps:$4 sm:$0xff]  }
 0x74e   : > { %v5194_v8 = vld [vmem:[%s7087_s11 + $0x220] ss:$24 sps:$4 sm:$0xff]  }
 0x74f   : > { %v2007_v17 = vadd.f32 %v2006_v9, %v2005_v7  ;;  %v2015_v11 = vrot.slane %v2014_v10, 2  ;;  %v5265_v7 = vld [vmem:[%s7090_s14 + $0x164] ss:$16 sps:$4 sm:$0xff]  }
 0x750   : > { %v5202_v9 = vld [vmem:[%s7090_s14 + $0x204] ss:$16 sps:$4 sm:$0xff]  }
 0x751   : > { %v2008_v39 = vrot.slane %v2007_v17, 1  ;;  %v2016_v20 = vadd.f32 %v2015_v11, %v2014_v10  ;;  %v5263_v10 = vld [vmem:[%s7090_s14 + $0x160] ss:$16 sps:$4 sm:$0xff]  }
 0x752   : > { %v5200_v11 = vld [vmem:[%s7090_s14 + $0x200] ss:$16 sps:$4 sm:$0xff]  }
 0x753   : > { %v2017_v12 = vrot.slane %v2016_v20, 1  ;;  %v2009_v16 = vadd.f32 %v2008_v39, %v2007_v17  ;;  %v5271_v17 = vld [vmem:[%s7090_s14 + $0x184] ss:$16 sps:$4 sm:$0xff]  }
 0x754   : > { %v5208_v39 = vld [vmem:[%s7090_s14 + $0x224] ss:$16 sps:$4 sm:$0xff]  }
 0x755   : > { %v2018_v13 = vadd.f32 %v2017_v12, %v2016_v20  ;;  %v2019_v14 = vmul.f32 0.0625, %v2009_v16  ;;  %v5269_v20 = vld [vmem:[%s7090_s14 + $0x180] ss:$16 sps:$4 sm:$0xff]   ;;  %v5277_v12 = vld [vmem:[%s7090_s14 + $0x1a4] ss:$16 sps:$4 sm:$0xff]  }
 0x756   : > { %v5206_v16 = vld [vmem:[%s7090_s14 + $0x220] ss:$16 sps:$4 sm:$0xff]  }
 0x757   : > { %v2020_v18 = vmul.f32 0.0625, %v2018_v13  ;;  %v6269_v22 = vpack.c.bf16 %v2019_v14, %v2019_v14  ;;  %v5214_v13 = vld [vmem:[%s7090_s14 + $0x244] ss:$16 sps:$4 sm:$0xff]   ;;  %v5275_v14 = vld [vmem:[%s7090_s14 + $0x1a0] ss:$16 sps:$4 sm:$0xff]  }
 0x759   : > { %v2022_v15 = vpack.c.bf16 %v2020_v18, %v2020_v18  ;;  %v5283_v18 = vld [vmem:[%s7090_s14 + $0x1c4] ss:$16 sps:$4 sm:$0xff]  }
 0x75b   : > { %4635 = vmatprep.mubr.msk.bf16.mxu1 %vm1548_vm6, %v2022_v15  ;;  %4636 = vmatprep.mubr.msk.bf16.mxu0 %vm1548_vm6, %v2022_v15 }
 0x75c   : > { %2523 = vmatmul.mubr.bf16.vlgmr.msra.gmra.mrb[16].mxu1 %v6269_v22  ;;  %2564 = vmatmul.mubr.bf16.vlgmr.msra.gmra.mrb[48].mxu0 %v6269_v22 }
 0x75d   : > { %2573 = vmatpush1.bf16.msra.mxu1 %v5161_v21  ;;  %4637 = vmatprep.mubr.msk.bf16.mxu1 %vm1548_vm6, %v2022_v15  ;;  %v5212_v15 = vld [vmem:[%s7090_s14 + $0x240] ss:$16 sps:$4 sm:$0xff]   ;;  %v5220_v21 = vld [vmem:[%s7090_s14 + $0x264] ss:$16 sps:$4 sm:$0xff]  }
 0x75e   : > { %2574 = vmatprep.subr.bf16.mxu1 %v5166_v23  ;;  %3805 = vmatpush1.bf16.msra.mxu0 %v5197_v24  ;;  %v5218_v23 = vld [vmem:[%s7090_s14 + $0x260] ss:$16 sps:$4 sm:$0xff]   ;;  %v5226_v24 = vld [vmem:[%s7090_s14 + $0x284] ss:$16 sps:$4 sm:$0xff]  }
 0x75f   : > { %3806 = vmatprep.subr.bf16.mxu0 %v5205_v25  ;;  %v5224_v25 = vld [vmem:[%s7090_s14 + $0x280] ss:$16 sps:$4 sm:$0xff]  }
 0x761   : > { %2575 = vmatpush1.bf16.msra.mxu1 %v5164_v26  ;;  %v5232_v26 = vld [vmem:[%s7090_s14 + $0x2a4] ss:$16 sps:$4 sm:$0xff]  }
 0x762   : > { %2576 = vmatprep.subr.bf16.mxu1 %v5169_v27  ;;  %3807 = vmatpush1.bf16.msra.mxu0 %v5203_v28  ;;  %v5230_v27 = vld [vmem:[%s7090_s14 + $0x2a0] ss:$16 sps:$4 sm:$0xff]   ;;  %v5238_v28 = vld [vmem:[%s7090_s14 + $0x2c4] ss:$16 sps:$4 sm:$0xff]  }
 0x763   : > { %3808 = vmatprep.subr.bf16.mxu0 %v5211_v29  ;;  %v5236_v29 = vld [vmem:[%s7090_s14 + $0x2c0] ss:$16 sps:$4 sm:$0xff]  }
 0x765   : > { %2577 = vmatpush1.bf16.msra.mxu1 %v5167_v30  ;;  %v5244_v30 = vld [vmem:[%s7090_s14 + $0x2e4] ss:$16 sps:$4 sm:$0xff]  }
 0x766   : > { %2578 = vmatprep.subr.bf16.mxu1 %v5172_v31  ;;  %3809 = vmatpush1.bf16.msra.mxu0 %v5209_v32  ;;  %v5242_v31 = vld [vmem:[%s7090_s14 + $0x2e0] ss:$16 sps:$4 sm:$0xff]   ;;  %v5250_v32 = vld [vmem:[%s7090_s14 + $0x304] ss:$16 sps:$4 sm:$0xff]  }
 0x767   : > { %3810 = vmatprep.subr.bf16.mxu0 %v5217_v33  ;;  %v5248_v33 = vld [vmem:[%s7090_s14 + $0x300] ss:$16 sps:$4 sm:$0xff]  }
 0x769   : > { %2579 = vmatpush1.bf16.msra.mxu1 %v5170_v34  ;;  %v5256_v34 = vld [vmem:[%s7090_s14 + $0x324] ss:$16 sps:$4 sm:$0xff]  }
 0x76a   : > { %2580 = vmatprep.subr.bf16.mxu1 %v5175_v35  ;;  %3811 = vmatpush1.bf16.msra.mxu0 %v5215_v36  ;;  %v5254_v35 = vld [vmem:[%s7090_s14 + $0x320] ss:$16 sps:$4 sm:$0xff]   ;;  %v5262_v36 = vld [vmem:[%s7090_s14 + $0x344] ss:$16 sps:$4 sm:$0xff]  }
 0x76b   : > { %3812 = vmatprep.subr.bf16.mxu0 %v5223_v37  ;;  %v5289_v37 = vld [vmem:[%s7090_s14 + $0x1e4] ss:$16 sps:$4 sm:$0xff]  }
 0x76d   : > { %2581 = vmatpush1.bf16.msra.mxu1 %v5173_v38  ;;  %v5260_v38 = vld [vmem:[%s7090_s14 + $0x340] ss:$16 sps:$4 sm:$0xff]  }
 0x76e   : > { %2582 = vmatprep.subr.bf16.mxu1 %v5178_v40  ;;  %3813 = vmatpush1.bf16.msra.mxu0 %v5221_v41  ;;  %v5287_v40 = vld [vmem:[%s7090_s14 + $0x1e0] ss:$16 sps:$4 sm:$0xff]   ;;  %v5268_v41 = vld [vmem:[%s7090_s14 + $0x364] ss:$16 sps:$4 sm:$0xff]  }
 0x76f   : > { %3814 = vmatprep.subr.bf16.mxu0 %v5229_v42  ;;  %v5295_v42 = vld [vmem:[%s7090_s14 + $0x404] ss:$16 sps:$4 sm:$0xff]  }
 0x771   : > { %2583 = vmatpush1.bf16.msra.mxu1 %v5176_v43  ;;  %v5266_v43 = vld [vmem:[%s7090_s14 + $0x360] ss:$16 sps:$4 sm:$0xff]  }
 0x772   : > { %2584 = vmatprep.subr.bf16.mxu1 %v5181_v44  ;;  %3815 = vmatpush1.bf16.msra.mxu0 %v5227_v45  ;;  %v5274_v44 = vld [vmem:[%s7090_s14 + $0x384] ss:$16 sps:$4 sm:$0xff]   ;;  %v5272_v45 = vld [vmem:[%s7090_s14 + $0x380] ss:$16 sps:$4 sm:$0xff]  }
 0x773   : > { %3816 = vmatprep.subr.bf16.mxu0 %v5235_v46  ;;  %v5280_v46 = vld [vmem:[%s7090_s14 + $0x3a4] ss:$16 sps:$4 sm:$0xff]  }
 0x775   : > { %2585 = vmatpush1.bf16.msra.mxu1 %v5179_v47  ;;  %v5278_v47 = vld [vmem:[%s7090_s14 + $0x3a0] ss:$16 sps:$4 sm:$0xff]  }
 0x776   : > { %2586 = vmatprep.subr.bf16.mxu1 %v5184_v48  ;;  %3817 = vmatpush1.bf16.msra.mxu0 %v5233_v49  ;;  %v5286_v48 = vld [vmem:[%s7090_s14 + $0x3c4] ss:$16 sps:$4 sm:$0xff]   ;;  %v5284_v49 = vld [vmem:[%s7090_s14 + $0x3c0] ss:$16 sps:$4 sm:$0xff]  }
 0x777   : > { %3818 = vmatprep.subr.bf16.mxu0 %v5241_v50  ;;  %v5292_v50 = vld [vmem:[%s7090_s14 + $0x3e4] ss:$16 sps:$4 sm:$0xff]  }
 0x779   : > { %2587 = vmatpush1.bf16.msra.mxu1 %v5182_v51  ;;  %v5290_v51 = vld [vmem:[%s7090_s14 + $0x3e0] ss:$16 sps:$4 sm:$0xff]  }
 0x77a   : > { %2588 = vmatprep.subr.bf16.mxu1 %v5187_v52  ;;  %3819 = vmatpush1.bf16.msra.mxu0 %v5239_v53  ;;  %v5298_v52 = vld [vmem:[%s7090_s14 + $0xc] ss:$16 sps:$4 sm:$0xff]   ;;  %v2467_v53 = vsub.s32 2, %v5941_v62 }
 0x77b   : > { %3820 = vmatprep.subr.bf16.mxu0 %v5247_v54  ;;  %v6542_v54 = vld [vmem:[%s7088_s12] sm:$0x3f] }
 0x77d   : > { %2589 = vmatpush1.bf16.msra.mxu1 %v5185_v55  ;;  %v2471_v55 = vsub.s32 3, %v5941_v62 }
 0x77e   : > { %2590 = vmatprep.subr.bf16.mxu1 %v5190_v56  ;;  %3821 = vmatpush1.bf16.msra.mxu0 %v5245_v57  ;;  %v2460_v56 = vrot.slane %v6542_v54, %v5950_v2  ;;  %v2468_v57 = vrot.slane %v6542_v54, %v2467_v53 }
 0x77f   : > { %3822 = vmatprep.subr.bf16.mxu0 %v5253_v60  ;;  %v2464_v60 = vrot.slane %v6542_v54, %v5944_v0 }
 0x781   : > { %2591 = vmatpush1.bf16.msra.mxu1 %v5188_v61  ;;  %v2472_v61 = vrot.slane %v6542_v54, %v2471_v55 }
 0x782   : > { %2592 = vmatprep.subr.bf16.mxu1 %v5193_v63  ;;  %3823 = vmatpush1.bf16.msra.mxu0 %v5251_v1 }
 0x783   : > { %3824 = vmatprep.subr.bf16.mxu0 %v5259_v3 }
 0x785   : > { %2593 = vmatpush1.bf16.msra.mxu1 %v5191_v4 }
 0x786   : > { %2594 = vmatprep.subr.bf16.mxu1 %v5196_v5  ;;  %3825 = vmatpush1.bf16.msra.mxu0 %v5257_v6 }
 0x787   : > { %3826 = vmatprep.subr.bf16.mxu0 %v5265_v7 }
 0x789   : > { %2595 = vmatpush1.bf16.msra.mxu1 %v5194_v8 }
 0x78a   : > { %3845 = vmatprep.subr.bf16.mxu1 %v5202_v9  ;;  %3827 = vmatpush1.bf16.msra.mxu0 %v5263_v10 }
 0x78b   : > { %3828 = vmatprep.subr.bf16.mxu0 %v5271_v17 }
 0x78c   : > { %2605 = vmatmul.mubr.bf16.vlgmr.msra.gmra.mrb[20].mxu1 %v6269_v22  ;;  %v5281_v22 = vld [vmem:[%s7090_s14 + $0x1c0] ss:$16 sps:$4 sm:$0xff]  }
 0x78d   : > { %3846 = vmatpush1.bf16.msra.mxu1 %v5200_v11 }
 0x78e   : > { %3847 = vmatprep.subr.bf16.mxu1 %v5208_v39  ;;  %3829 = vmatpush1.bf16.msra.mxu0 %v5269_v20 }
 0x78f   : > { %3830 = vmatprep.subr.bf16.mxu0 %v5277_v12  ;;  %v5293_v12 = vld [vmem:[%s7090_s14 + $0x400] ss:$16 sps:$4 sm:$0xff]  }
 0x791   : > { %3848 = vmatpush1.bf16.msra.mxu1 %v5206_v16  ;;  %v5296_v16 = vld [vmem:[%s7090_s14 + $0x8] ss:$16 sps:$4 sm:$0xff]  }
 0x792   : > { %3849 = vmatprep.subr.bf16.mxu1 %v5214_v13  ;;  %3831 = vmatpush1.bf16.msra.mxu0 %v5275_v14 }
 0x793   : > { %3832 = vmatprep.subr.bf16.mxu0 %v5283_v18  ;;  %v5301_v18 = vld [vmem:[%s7090_s14 + $0x424] ss:$16 sps:$4 sm:$0xff]  }
 0x795   : > { %3850 = vmatpush1.bf16.msra.mxu1 %v5212_v15  ;;  %v5304_v15 = vld [vmem:[%s7090_s14 + $0x2c] ss:$16 sps:$4 sm:$0xff]  }
 0x796   : > { %3851 = vmatprep.subr.bf16.mxu1 %v5220_v21  ;;  %3833 = vmatpush1.bf16.msra.mxu0 %v5281_v22  ;;  %v5299_v21 = vld [vmem:[%s7090_s14 + $0x420] ss:$16 sps:$4 sm:$0xff]   ;;  %v5302_v22 = vld [vmem:[%s7090_s14 + $0x28] ss:$16 sps:$4 sm:$0xff]  }
 0x797   : > { %3834 = vmatprep.subr.bf16.mxu0 %v5289_v37  ;;  %v5323_v37 = vld [vmem:[%s7090_s14 + $0x4a0] ss:$16 sps:$4 sm:$0xff]  }
 0x799   : > { %3852 = vmatpush1.bf16.msra.mxu1 %v5218_v23  ;;  %v5307_v23 = vld [vmem:[%s7090_s14 + $0x444] ss:$16 sps:$4 sm:$0xff]  }
 0x79a   : > { %3853 = vmatprep.subr.bf16.mxu1 %v5226_v24  ;;  %3835 = vmatpush1.bf16.msra.mxu0 %v5287_v40  ;;  %v5310_v24 = vld [vmem:[%s7090_s14 + $0x4c] ss:$16 sps:$4 sm:$0xff]   ;;  %v5331_v40 = vld [vmem:[%s7090_s14 + $0x4c4] ss:$16 sps:$4 sm:$0xff]  }
 0x79b   : > { %3886 = vmatprep.subr.bf16.mxu0 %v5295_v42  ;;  %v5329_v42 = vld [vmem:[%s7090_s14 + $0x4c0] ss:$16 sps:$4 sm:$0xff]  }
 0x79d   : > { %3854 = vmatpush1.bf16.msra.mxu1 %v5224_v25  ;;  %v5305_v25 = vld [vmem:[%s7090_s14 + $0x440] ss:$16 sps:$4 sm:$0xff]  }
 0x79e   : > { %3855 = vmatprep.subr.bf16.mxu1 %v5232_v26  ;;  %v5308_v26 = vld [vmem:[%s7090_s14 + $0x48] ss:$16 sps:$4 sm:$0xff]  }
 0x7a1   : > { %3856 = vmatpush1.bf16.msra.mxu1 %v5230_v27  ;;  %v5313_v27 = vld [vmem:[%s7090_s14 + $0x464] ss:$16 sps:$4 sm:$0xff]  }
 0x7a2   : > { %3857 = vmatprep.subr.bf16.mxu1 %v5238_v28  ;;  %v5316_v28 = vld [vmem:[%s7090_s14 + $0x6c] ss:$16 sps:$4 sm:$0xff]  }
 0x7a5   : > { %3858 = vmatpush1.bf16.msra.mxu1 %v5236_v29  ;;  %v5311_v29 = vld [vmem:[%s7090_s14 + $0x460] ss:$16 sps:$4 sm:$0xff]  }
 0x7a6   : > { %3859 = vmatprep.subr.bf16.mxu1 %v5244_v30  ;;  %v5314_v30 = vld [vmem:[%s7090_s14 + $0x68] ss:$16 sps:$4 sm:$0xff]  }
 0x7a9   : > { %3860 = vmatpush1.bf16.msra.mxu1 %v5242_v31  ;;  %v5319_v31 = vld [vmem:[%s7090_s14 + $0x484] ss:$16 sps:$4 sm:$0xff]  }
 0x7aa   : > { %3861 = vmatprep.subr.bf16.mxu1 %v5250_v32  ;;  %v5322_v32 = vld [vmem:[%s7090_s14 + $0x8c] ss:$16 sps:$4 sm:$0xff]  }
 0x7ad   : > { %3862 = vmatpush1.bf16.msra.mxu1 %v5248_v33  ;;  %v5317_v33 = vld [vmem:[%s7090_s14 + $0x480] ss:$16 sps:$4 sm:$0xff]  }
 0x7ae   : > { %3863 = vmatprep.subr.bf16.mxu1 %v5256_v34  ;;  %v5320_v34 = vld [vmem:[%s7090_s14 + $0x88] ss:$16 sps:$4 sm:$0xff]  }
 0x7b1   : > { %3864 = vmatpush1.bf16.msra.mxu1 %v5254_v35  ;;  %v5325_v35 = vld [vmem:[%s7090_s14 + $0x4a4] ss:$16 sps:$4 sm:$0xff]  }
 0x7b2   : > { %3865 = vmatprep.subr.bf16.mxu1 %v5262_v36  ;;  %v5328_v36 = vld [vmem:[%s7090_s14 + $0xac] ss:$16 sps:$4 sm:$0xff]  }
 0x7b5   : > { %3866 = vmatpush1.bf16.msra.mxu1 %v5260_v38  ;;  %v5326_v38 = vld [vmem:[%s7090_s14 + $0xa8] ss:$16 sps:$4 sm:$0xff]  }
 0x7b6   : > { %3867 = vmatprep.subr.bf16.mxu1 %v5268_v41  ;;  %v5334_v41 = vld [vmem:[%s7090_s14 + $0xcc] ss:$16 sps:$4 sm:$0xff]  }
 0x7b9   : > { %3868 = vmatpush1.bf16.msra.mxu1 %v5266_v43  ;;  %v5332_v43 = vld [vmem:[%s7090_s14 + $0xc8] ss:$16 sps:$4 sm:$0xff]  }
 0x7ba   : > { %3869 = vmatprep.subr.bf16.mxu1 %v5274_v44  ;;  %v5337_v44 = vld [vmem:[%s7090_s14 + $0x4e4] ss:$16 sps:$4 sm:$0xff]  }
 0x7bd   : > { %3870 = vmatpush1.bf16.msra.mxu1 %v5272_v45  ;;  %v5340_v45 = vld [vmem:[%s7090_s14 + $0xec] ss:$16 sps:$4 sm:$0xff]  }
 0x7be   : > { %3871 = vmatprep.subr.bf16.mxu1 %v5280_v46  ;;  %v5335_v46 = vld [vmem:[%s7090_s14 + $0x4e0] ss:$16 sps:$4 sm:$0xff]  }
 0x7c1   : > { %3872 = vmatpush1.bf16.msra.mxu1 %v5278_v47  ;;  %v5338_v47 = vld [vmem:[%s7090_s14 + $0xe8] ss:$16 sps:$4 sm:$0xff]  }
 0x7c2   : > { %3873 = vmatprep.subr.bf16.mxu1 %v5286_v48  ;;  %v5343_v48 = vld [vmem:[%s7090_s14 + $0x504] ss:$16 sps:$4 sm:$0xff]  }
 0x7c5   : > { %3874 = vmatpush1.bf16.msra.mxu1 %v5284_v49  ;;  %v5346_v49 = vld [vmem:[%s7090_s14 + $0x10c] ss:$16 sps:$4 sm:$0xff]  }
 0x7c6   : > { %3875 = vmatprep.subr.bf16.mxu1 %v5292_v50  ;;  %v5341_v50 = vld [vmem:[%s7090_s14 + $0x500] ss:$16 sps:$4 sm:$0xff]  }
 0x7c9   : > { %3876 = vmatpush1.bf16.msra.mxu1 %v5290_v51  ;;  %v5344_v51 = vld [vmem:[%s7090_s14 + $0x108] ss:$16 sps:$4 sm:$0xff]  }
 0x7ca   : > { %3927 = vmatprep.subr.bf16.mxu1 %v5298_v52  ;;  %v5349_v52 = vld [vmem:[%s7090_s14 + $0x524] ss:$16 sps:$4 sm:$0xff]  }
 0x82f   : > { %v2524_v63 = vpop.f32.mrb[16].mxu1  ;;  %v2565_v1 = vpop.f32.mrb[48].mxu0 }
 0x830   : > { %v2525_v3 = vadd.f32 %v2524_v63, %v2460_v56  ;;  %v2566_v4 = vadd.f32 %v2565_v1, %v2468_v57  ;;  %v2526_v5 = vpop.f32.mrb[17].mxu1  ;;  %v2567_v6 = vpop.f32.mrb[49].mxu0  ;;  %v5352_v56 = vld [vmem:[%s7090_s14 + $0x12c] ss:$16 sps:$4 sm:$0xff]   ;;  %v5347_v57 = vld [vmem:[%s7090_s14 + $0x520] ss:$16 sps:$4 sm:$0xff]  }
 0x831   : > { %v2527_v7 = vadd.f32 %v2526_v5, %v2464_v60  ;;  %v2568_v8 = vadd.f32 %v2567_v6, %v2472_v61  ;;  %v2528_v9 = vpop.f32.mrb[18].mxu1  ;;  %v2569_v10 = vpop.f32.mrb[50].mxu0  ;;  %v5350_v60 = vld [vmem:[%s7090_s14 + $0x128] ss:$16 sps:$4 sm:$0xff]   ;;  %v5355_v61 = vld [vmem:[%s7090_s14 + $0x544] ss:$16 sps:$4 sm:$0xff]  }
 0x832   : > { %v2529_v17 = vpop.f32.mrb[19].mxu1  ;;  %v2570_v11 = vpop.f32.mrb[51].mxu0  ;;  %v6563_v13 = vpack.c.bf16 %v2525_v3, %v2525_v3  ;;  %v6565_v14 = vpack.c.bf16 %v2566_v4, %v2566_v4  ;;  %v5358_v63 = vld [vmem:[%s7090_s14 + $0x14c] ss:$16 sps:$4 sm:$0xff]   ;;  %v2479_v1 = vsub.s32 5, %v5941_v62 }
 0x833   : > { %v2647_v39 = vpack.c.bf16 %v2527_v7, %v2527_v7  ;;  %v6555_v20 = vpack.c.bf16 %v2568_v8, %v2568_v8  ;;  %v5353_v3 = vld [vmem:[%s7090_s14 + $0x540] ss:$16 sps:$4 sm:$0xff]   ;;  %v5356_v4 = vld [vmem:[%s7090_s14 + $0x148] ss:$16 sps:$4 sm:$0xff]   ;;  %v5361_v5 = vld [vmem:[%s7090_s14 + $0x564] ss:$16 sps:$4 sm:$0xff]  }
 0x834   : > { %v5364_v6 = vld [vmem:[%s7090_s14 + $0x16c] ss:$16 sps:$4 sm:$0xff]   ;;  %v2480_v7 = vrot.slane %v6542_v54, %v2479_v1  ;;  %v5359_v9 = vld [vmem:[%s7090_s14 + $0x560] ss:$16 sps:$4 sm:$0xff]   ;;  %v5362_v10 = vld [vmem:[%s7090_s14 + $0x168] ss:$16 sps:$4 sm:$0xff]  }
 0x835   : > { %3836 = vmatprep.mubr.bf16.mxu0 %v2647_v39  ;;  %3877 = vmatprep.mubr.bf16.mxu1 %v6555_v20  ;;  %v5367_v11 = vld [vmem:[%s7090_s14 + $0x584] ss:$16 sps:$4 sm:$0xff]   ;;  %v5424_v1 = vld [vmem:[%s7090_s14 + $0x4ac] ss:$16 sps:$4 sm:$0xff]  }
 0x836   : > { %3837 = vmatmul.mubr.bf16.vlgmr.msra.gmra.mrb[52].mxu0 %v6563_v13  ;;  %3878 = vmatmul.mubr.bf16.vlgmr.msra.gmra.mrb[24].mxu1 %v6565_v14 }
 0x837   : > { %3887 = vmatpush1.bf16.msra.mxu0 %v5293_v12  ;;  %3928 = vmatpush1.bf16.msra.mxu1 %v5296_v16 }
 0x838   : > { %3959 = vmatprep.mubr.bf16.mxu1 %v2647_v39  ;;  %3888 = vmatprep.subr.bf16.mxu0 %v5301_v18  ;;  %v5370_v39 = vld [vmem:[%s7090_s14 + $0x18c] ss:$16 sps:$4 sm:$0xff]  }
 0x839   : > { %3929 = vmatprep.subr.bf16.mxu1 %v5304_v15 }
 0x83b   : > { %3889 = vmatpush1.bf16.msra.mxu0 %v5299_v21  ;;  %3930 = vmatpush1.bf16.msra.mxu1 %v5302_v22  ;;  %v5365_v21 = vld [vmem:[%s7090_s14 + $0x580] ss:$16 sps:$4 sm:$0xff]   ;;  %v5368_v22 = vld [vmem:[%s7090_s14 + $0x188] ss:$16 sps:$4 sm:$0xff]  }
 0x83c   : > { %3890 = vmatprep.subr.bf16.mxu0 %v5307_v23  ;;  %3931 = vmatprep.subr.bf16.mxu1 %v5310_v24  ;;  %v5373_v23 = vld [vmem:[%s7090_s14 + $0x5a4] ss:$16 sps:$4 sm:$0xff]   ;;  %v5376_v24 = vld [vmem:[%s7090_s14 + $0x1ac] ss:$16 sps:$4 sm:$0xff]  }
 0x83f   : > { %3891 = vmatpush1.bf16.msra.mxu0 %v5305_v25  ;;  %3932 = vmatpush1.bf16.msra.mxu1 %v5308_v26  ;;  %v5371_v25 = vld [vmem:[%s7090_s14 + $0x5a0] ss:$16 sps:$4 sm:$0xff]   ;;  %v5374_v26 = vld [vmem:[%s7090_s14 + $0x1a8] ss:$16 sps:$4 sm:$0xff]  }
 0x840   : > { %3892 = vmatprep.subr.bf16.mxu0 %v5313_v27  ;;  %3933 = vmatprep.subr.bf16.mxu1 %v5316_v28  ;;  %v2475_v27 = vsub.s32 4, %v5941_v62  ;;  %v5379_v28 = vld [vmem:[%s7090_s14 + $0x5c4] ss:$16 sps:$4 sm:$0xff]  }
 0x843   : > { %3893 = vmatpush1.bf16.msra.mxu0 %v5311_v29  ;;  %3934 = vmatpush1.bf16.msra.mxu1 %v5314_v30  ;;  %v5382_v29 = vld [vmem:[%s7090_s14 + $0x1cc] ss:$16 sps:$4 sm:$0xff]   ;;  %v5377_v30 = vld [vmem:[%s7090_s14 + $0x5c0] ss:$16 sps:$4 sm:$0xff]  }
 0x844   : > { %3894 = vmatprep.subr.bf16.mxu0 %v5319_v31  ;;  %3935 = vmatprep.subr.bf16.mxu1 %v5322_v32  ;;  %v5380_v31 = vld [vmem:[%s7090_s14 + $0x1c8] ss:$16 sps:$4 sm:$0xff]   ;;  %v2476_v32 = vrot.slane %v6542_v54, %v2475_v27 }
 0x845   : > { %v5386_v54 = vld [vmem:[%s7090_s14 + $0x1e8] ss:$16 sps:$4 sm:$0xff]  }
 0x846   : > { %v5452_v27 = vld [vmem:[%s7090_s14 + $0x548] ss:$16 sps:$4 sm:$0xff]  }
 0x847   : > { %3895 = vmatpush1.bf16.msra.mxu0 %v5317_v33  ;;  %3936 = vmatpush1.bf16.msra.mxu1 %v5320_v34  ;;  %v5385_v33 = vld [vmem:[%s7090_s14 + $0x5e4] ss:$16 sps:$4 sm:$0xff]   ;;  %v5388_v34 = vld [vmem:[%s7090_s14 + $0x1ec] ss:$16 sps:$4 sm:$0xff]  }
 0x848   : > { %3896 = vmatprep.subr.bf16.mxu0 %v5325_v35  ;;  %3937 = vmatprep.subr.bf16.mxu1 %v5328_v36  ;;  %v5383_v35 = vld [vmem:[%s7090_s14 + $0x5e0] ss:$16 sps:$4 sm:$0xff]  }
 0x84b   : > { %3897 = vmatpush1.bf16.msra.mxu0 %v5323_v37  ;;  %3938 = vmatpush1.bf16.msra.mxu1 %v5326_v38  ;;  %v5391_v37 = vld [vmem:[%s7090_s14 + $0x20c] ss:$16 sps:$4 sm:$0xff]  }
 0x84c   : > { %3898 = vmatprep.subr.bf16.mxu0 %v5331_v40  ;;  %3939 = vmatprep.subr.bf16.mxu1 %v5334_v41  ;;  %v5394_v38 = vld [vmem:[%s7090_s14 + $0x40c] ss:$16 sps:$4 sm:$0xff]   ;;  %v5389_v40 = vld [vmem:[%s7090_s14 + $0x208] ss:$16 sps:$4 sm:$0xff]  }
 0x84f   : > { %3899 = vmatpush1.bf16.msra.mxu0 %v5329_v42  ;;  %3940 = vmatpush1.bf16.msra.mxu1 %v5332_v43  ;;  %v5392_v42 = vld [vmem:[%s7090_s14 + $0x408] ss:$16 sps:$4 sm:$0xff]   ;;  %v5397_v43 = vld [vmem:[%s7090_s14 + $0x22c] ss:$16 sps:$4 sm:$0xff]  }
 0x850   : > { %3900 = vmatprep.subr.bf16.mxu0 %v5337_v44  ;;  %3941 = vmatprep.subr.bf16.mxu1 %v5340_v45  ;;  %v5400_v44 = vld [vmem:[%s7090_s14 + $0x42c] ss:$16 sps:$4 sm:$0xff]   ;;  %v5395_v45 = vld [vmem:[%s7090_s14 + $0x228] ss:$16 sps:$4 sm:$0xff]  }
 0x853   : > { %3901 = vmatpush1.bf16.msra.mxu0 %v5335_v46  ;;  %3942 = vmatpush1.bf16.msra.mxu1 %v5338_v47  ;;  %v5398_v46 = vld [vmem:[%s7090_s14 + $0x428] ss:$16 sps:$4 sm:$0xff]   ;;  %v5403_v47 = vld [vmem:[%s7090_s14 + $0x24c] ss:$16 sps:$4 sm:$0xff]  }
 0x854   : > { %3902 = vmatprep.subr.bf16.mxu0 %v5343_v48  ;;  %3943 = vmatprep.subr.bf16.mxu1 %v5346_v49  ;;  %v5404_v48 = vld [vmem:[%s7090_s14 + $0x448] ss:$16 sps:$4 sm:$0xff]   ;;  %v5409_v49 = vld [vmem:[%s7090_s14 + $0x26c] ss:$16 sps:$4 sm:$0xff]  }
 0x857   : > { %3903 = vmatpush1.bf16.msra.mxu0 %v5341_v50  ;;  %3944 = vmatpush1.bf16.msra.mxu1 %v5344_v51  ;;  %v5412_v50 = vld [vmem:[%s7090_s14 + $0x46c] ss:$16 sps:$4 sm:$0xff]   ;;  %v5407_v51 = vld [vmem:[%s7090_s14 + $0x268] ss:$16 sps:$4 sm:$0xff]  }
 0x858   : > { %3904 = vmatprep.subr.bf16.mxu0 %v5349_v52  ;;  %3945 = vmatprep.subr.bf16.mxu1 %v5352_v56  ;;  %v5410_v52 = vld [vmem:[%s7090_s14 + $0x468] ss:$16 sps:$4 sm:$0xff]   ;;  %v5415_v56 = vld [vmem:[%s7090_s14 + $0x28c] ss:$16 sps:$4 sm:$0xff]  }
 0x85b   : > { %3905 = vmatpush1.bf16.msra.mxu0 %v5347_v57  ;;  %3946 = vmatpush1.bf16.msra.mxu1 %v5350_v60  ;;  %v5418_v57 = vld [vmem:[%s7090_s14 + $0x48c] ss:$16 sps:$4 sm:$0xff]   ;;  %v5413_v60 = vld [vmem:[%s7090_s14 + $0x288] ss:$16 sps:$4 sm:$0xff]  }
 0x85c   : > { %3906 = vmatprep.subr.bf16.mxu0 %v5355_v61  ;;  %3947 = vmatprep.subr.bf16.mxu1 %v5358_v63  ;;  %v5416_v61 = vld [vmem:[%s7090_s14 + $0x488] ss:$16 sps:$4 sm:$0xff]   ;;  %v5421_v63 = vld [vmem:[%s7090_s14 + $0x2ac] ss:$16 sps:$4 sm:$0xff]  }
 0x85f   : > { %v2606_v8 = vpop.f32.mrb[20].mxu1  ;;  %3907 = vmatpush1.bf16.msra.mxu0 %v5353_v3  ;;  %3948 = vmatpush1.bf16.msra.mxu1 %v5356_v4  ;;  %v5419_v3 = vld [vmem:[%s7090_s14 + $0x2a8] ss:$16 sps:$4 sm:$0xff]  }
 0x860   : > { %v2608_v17 = vpop.f32.mrb[21].mxu1  ;;  %3908 = vmatprep.subr.bf16.mxu0 %v5361_v5  ;;  %3949 = vmatprep.subr.bf16.mxu1 %v5364_v6  ;;  %v2607_v36 = vadd.f32 %v2606_v8, %v2476_v32  ;;  %v5422_v4 = vld [vmem:[%s7090_s14 + $0x4a8] ss:$16 sps:$4 sm:$0xff]   ;;  %v5427_v5 = vld [vmem:[%s7090_s14 + $0x2cc] ss:$16 sps:$4 sm:$0xff]  }
 0x861   : > { %v2609_v12 = vadd.f32 %v2608_v17, %v2480_v7  ;;  %v2610_v16 = vpop.f32.mrb[22].mxu1  ;;  %v5430_v6 = vld [vmem:[%s7090_s14 + $0x4cc] ss:$16 sps:$4 sm:$0xff]   ;;  %v5425_v7 = vld [vmem:[%s7090_s14 + $0x2c8] ss:$16 sps:$4 sm:$0xff]  }
 0x862   : > { %v2611_v18 = vpop.f32.mrb[23].mxu1  ;;  %v6763_v41 = vpack.c.bf16 %v2607_v36, %v2607_v36  ;;  %v5428_v8 = vld [vmem:[%s7090_s14 + $0x4c8] ss:$16 sps:$4 sm:$0xff]   ;;  %v5463_v32 = vld [vmem:[%s7090_s14 + $0x38c] ss:$16 sps:$4 sm:$0xff]  }
 0x863   : > { %v2651_v15 = vpack.c.bf16 %v2609_v12, %v2609_v12  ;;  %3909 = vmatpush1.bf16.msra.mxu0 %v5359_v9  ;;  %3950 = vmatpush1.bf16.msra.mxu1 %v5362_v10  ;;  %v5433_v9 = vld [vmem:[%s7090_s14 + $0x2ec] ss:$16 sps:$4 sm:$0xff]   ;;  %v5431_v17 = vld [vmem:[%s7090_s14 + $0x2e8] ss:$16 sps:$4 sm:$0xff]  }
 0x864   : > { %3910 = vmatprep.subr.bf16.mxu0 %v5367_v11  ;;  %3951 = vmatprep.subr.bf16.mxu1 %v5370_v39  ;;  %v5436_v10 = vld [vmem:[%s7090_s14 + $0x4ec] ss:$16 sps:$4 sm:$0xff]   ;;  %v5434_v11 = vld [vmem:[%s7090_s14 + $0x4e8] ss:$16 sps:$4 sm:$0xff]  }
 0x865   : > { %3918 = vmatprep.mubr.bf16.mxu0 %v2651_v15  ;;  %v5439_v39 = vld [vmem:[%s7090_s14 + $0x30c] ss:$16 sps:$4 sm:$0xff]   ;;  %v5437_v16 = vld [vmem:[%s7090_s14 + $0x308] ss:$16 sps:$4 sm:$0xff]  }
 0x866   : > { %v5442_v12 = vld [vmem:[%s7090_s14 + $0x50c] ss:$16 sps:$4 sm:$0xff]   ;;  %v5440_v18 = vld [vmem:[%s7090_s14 + $0x508] ss:$16 sps:$4 sm:$0xff]  }
 0x867   : > { %3911 = vmatpush1.bf16.msra.mxu0 %v5365_v21  ;;  %3952 = vmatpush1.bf16.msra.mxu1 %v5368_v22  ;;  %v5448_v21 = vld [vmem:[%s7090_s14 + $0x52c] ss:$16 sps:$4 sm:$0xff]   ;;  %v5443_v22 = vld [vmem:[%s7090_s14 + $0x328] ss:$16 sps:$4 sm:$0xff]  }
 0x868   : > { %3912 = vmatprep.subr.bf16.mxu0 %v5373_v23  ;;  %3953 = vmatprep.subr.bf16.mxu1 %v5376_v24  ;;  %v5446_v23 = vld [vmem:[%s7090_s14 + $0x528] ss:$16 sps:$4 sm:$0xff]   ;;  %v5451_v24 = vld [vmem:[%s7090_s14 + $0x34c] ss:$16 sps:$4 sm:$0xff]  }
 0x869   : > { %v5472_v36 = vld [vmem:[%s7090_s14 + $0x5ac] ss:$16 sps:$4 sm:$0xff]  }
 0x86b   : > { %3913 = vmatpush1.bf16.msra.mxu0 %v5371_v25  ;;  %3954 = vmatpush1.bf16.msra.mxu1 %v5374_v26  ;;  %v5454_v25 = vld [vmem:[%s7090_s14 + $0x54c] ss:$16 sps:$4 sm:$0xff]   ;;  %v5449_v26 = vld [vmem:[%s7090_s14 + $0x348] ss:$16 sps:$4 sm:$0xff]  }
 0x86c   : > { %3914 = vmatprep.subr.bf16.mxu0 %v5379_v28  ;;  %3955 = vmatprep.subr.bf16.mxu1 %v5382_v29  ;;  %v5457_v28 = vld [vmem:[%s7090_s14 + $0x36c] ss:$16 sps:$4 sm:$0xff]  }
 0x86d   : > { %v5460_v29 = vld [vmem:[%s7090_s14 + $0x56c] ss:$16 sps:$4 sm:$0xff]  }
 0x86f   : > { %3915 = vmatpush1.bf16.msra.mxu0 %v5377_v30  ;;  %3956 = vmatpush1.bf16.msra.mxu1 %v5380_v31  ;;  %v5455_v30 = vld [vmem:[%s7090_s14 + $0x368] ss:$16 sps:$4 sm:$0xff]  }
 0x870   : > { %3916 = vmatprep.subr.bf16.mxu0 %v5385_v33  ;;  %3957 = vmatprep.subr.bf16.mxu1 %v5388_v34  ;;  %v5458_v31 = vld [vmem:[%s7090_s14 + $0x568] ss:$16 sps:$4 sm:$0xff]   ;;  %v5466_v33 = vld [vmem:[%s7090_s14 + $0x58c] ss:$16 sps:$4 sm:$0xff]  }
 0x871   : > { %v5461_v34 = vld [vmem:[%s7090_s14 + $0x388] ss:$16 sps:$4 sm:$0xff]  }
 0x873   : > { %3917 = vmatpush1.bf16.msra.mxu0 %v5383_v35  ;;  %3958 = vmatpush1.bf16.msra.mxu1 %v5386_v54  ;;  %v5464_v35 = vld [vmem:[%s7090_s14 + $0x588] ss:$16 sps:$4 sm:$0xff]   ;;  %v5469_v54 = vld [vmem:[%s7090_s14 + $0x3ac] ss:$16 sps:$4 sm:$0xff]  }
 0x874   : > { %3968 = vmatprep.subr.bf16.mxu0 %v5391_v37  ;;  %4009 = vmatprep.subr.bf16.mxu1 %v5394_v38  ;;  %v5467_v37 = vld [vmem:[%s7090_s14 + $0x3a8] ss:$16 sps:$4 sm:$0xff]  }
 0x875   : > { %v5470_v38 = vld [vmem:[%s7090_s14 + $0x5a8] ss:$16 sps:$4 sm:$0xff]  }
 0x876   : > { %3919 = vmatmul.mubr.bf16.vlgmr.msra.gmra.mrb[56].mxu0 %v6763_v41  ;;  %3960 = vmatmul.mubr.bf16.vlgmr.msra.gmra.mrb[28].mxu1 %v6563_v13  ;;  %v5401_v13 = vld [vmem:[%s7090_s14 + $0x248] ss:$16 sps:$4 sm:$0xff]  }
 0x877   : > { %3969 = vmatpush1.bf16.msra.mxu0 %v5389_v40  ;;  %4000 = vmatprep.mubr.bf16.mxu0 %v6555_v20  ;;  %v5406_v20 = vld [vmem:[%s7090_s14 + $0x44c] ss:$16 sps:$4 sm:$0xff]  }
 0x878   : > { %4010 = vmatpush1.bf16.msra.mxu1 %v5392_v42  ;;  %4041 = vmatprep.mubr.bf16.mxu1 %v2651_v15  ;;  %v5445_v15 = vld [vmem:[%s7090_s14 + $0x32c] ss:$16 sps:$4 sm:$0xff]  }
 0x879   : > { %3970 = vmatprep.subr.bf16.mxu0 %v5397_v43  ;;  %4011 = vmatprep.subr.bf16.mxu1 %v5400_v44  ;;  %v5475_v40 = vld [vmem:[%s7090_s14 + $0x3cc] ss:$16 sps:$4 sm:$0xff]   ;;  %v5473_v43 = vld [vmem:[%s7090_s14 + $0x3c8] ss:$16 sps:$4 sm:$0xff]  }
 0x87a   : > { %v5478_v42 = vld [vmem:[%s7090_s14 + $0x5cc] ss:$16 sps:$4 sm:$0xff]   ;;  %v5476_v44 = vld [vmem:[%s7090_s14 + $0x5c8] ss:$16 sps:$4 sm:$0xff]  }
 0x87b   : > { %3971 = vmatpush1.bf16.msra.mxu0 %v5395_v45  ;;  %v5481_v45 = vld [vmem:[%s7090_s14 + $0x3ec] ss:$16 sps:$4 sm:$0xff]  }
 0x87c   : > { %4012 = vmatpush1.bf16.msra.mxu1 %v5398_v46  ;;  %3972 = vmatprep.subr.bf16.mxu0 %v5403_v47  ;;  %v5484_v46 = vld [vmem:[%s7090_s14 + $0x5ec] ss:$16 sps:$4 sm:$0xff]   ;;  %v5479_v47 = vld [vmem:[%s7090_s14 + $0x3e8] ss:$16 sps:$4 sm:$0xff]  }
 0x87d   : > { %4013 = vmatprep.subr.bf16.mxu1 %v5406_v20  ;;  %v5482_v20 = vld [vmem:[%s7090_s14 + $0x5e8] ss:$16 sps:$4 sm:$0xff]  }
 0x87f   : > { %3973 = vmatpush1.bf16.msra.mxu0 %v5401_v13  ;;  %v5487_v13 = vld [vmem:[%s7089_s13 + $0x4] ss:$16 sps:$4 sm:$0xff]  }
 0x880   : > { %4014 = vmatpush1.bf16.msra.mxu1 %v5404_v48  ;;  %3974 = vmatprep.subr.bf16.mxu0 %v5409_v49  ;;  %v5490_v48 = vld [vmem:[%s7089_s13 + $0xc] ss:$16 sps:$4 sm:$0xff]   ;;  %v5485_v49 = vld [vmem:[%s7089_s13] ss:$16 sps:$4 sm:$0xff]  }
 0x881   : > { %4015 = vmatprep.subr.bf16.mxu1 %v5412_v50  ;;  %v5488_v50 = vld [vmem:[%s7089_s13 + $0x8] ss:$16 sps:$4 sm:$0xff]  }
 0x883   : > { %3975 = vmatpush1.bf16.msra.mxu0 %v5407_v51  ;;  %v5493_v51 = vld [vmem:[%s7089_s13 + $0x24] ss:$16 sps:$4 sm:$0xff]  }
 0x884   : > { %4016 = vmatpush1.bf16.msra.mxu1 %v5410_v52  ;;  %3976 = vmatprep.subr.bf16.mxu0 %v5415_v56  ;;  %v5496_v52 = vld [vmem:[%s7089_s13 + $0x2c] ss:$16 sps:$4 sm:$0xff]   ;;  %v5491_v56 = vld [vmem:[%s7089_s13 + $0x20] ss:$16 sps:$4 sm:$0xff]  }
 0x885   : > { %4017 = vmatprep.subr.bf16.mxu1 %v5418_v57  ;;  %v5494_v57 = vld [vmem:[%s7089_s13 + $0x28] ss:$16 sps:$4 sm:$0xff]  }
 0x887   : > { %3977 = vmatpush1.bf16.msra.mxu0 %v5413_v60  ;;  %v5499_v60 = vld [vmem:[%s7089_s13 + $0x44] ss:$16 sps:$4 sm:$0xff]  }
 0x888   : > { %4018 = vmatpush1.bf16.msra.mxu1 %v5416_v61  ;;  %3978 = vmatprep.subr.bf16.mxu0 %v5421_v63  ;;  %v5500_v61 = vld [vmem:[%s7089_s13 + $0x48] ss:$16 sps:$4 sm:$0xff]   ;;  %v5505_v63 = vld [vmem:[%s7089_s13 + $0x64] ss:$16 sps:$4 sm:$0xff]  }
 0x889   : > { %4019 = vmatprep.subr.bf16.mxu1 %v5424_v1  ;;  %v5503_v1 = vld [vmem:[%s7089_s13 + $0x60] ss:$16 sps:$4 sm:$0xff]  }
 0x88b   : > { %3979 = vmatpush1.bf16.msra.mxu0 %v5419_v3  ;;  %v5506_v3 = vld [vmem:[%s7089_s13 + $0x68] ss:$16 sps:$4 sm:$0xff]  }
 0x88c   : > { %4020 = vmatpush1.bf16.msra.mxu1 %v5422_v4  ;;  %3980 = vmatprep.subr.bf16.mxu0 %v5427_v5  ;;  %v5511_v4 = vld [vmem:[%s7089_s13 + $0x84] ss:$16 sps:$4 sm:$0xff]   ;;  %v5514_v5 = vld [vmem:[%s7089_s13 + $0x8c] ss:$16 sps:$4 sm:$0xff]  }
 0x88d   : > { %4021 = vmatprep.subr.bf16.mxu1 %v5430_v6  ;;  %v5509_v6 = vld [vmem:[%s7089_s13 + $0x80] ss:$16 sps:$4 sm:$0xff]  }
 0x88f   : > { %3981 = vmatpush1.bf16.msra.mxu0 %v5425_v7  ;;  %v5512_v7 = vld [vmem:[%s7089_s13 + $0x88] ss:$16 sps:$4 sm:$0xff]  }
 0x890   : > { %4022 = vmatpush1.bf16.msra.mxu1 %v5428_v8  ;;  %3982 = vmatprep.subr.bf16.mxu0 %v5433_v9  ;;  %v5517_v8 = vld [vmem:[%s7089_s13 + $0xa4] ss:$16 sps:$4 sm:$0xff]   ;;  %v5520_v9 = vld [vmem:[%s7089_s13 + $0xac] ss:$16 sps:$4 sm:$0xff]  }
 0x891   : > { %4023 = vmatprep.subr.bf16.mxu1 %v5436_v10  ;;  %v5515_v10 = vld [vmem:[%s7089_s13 + $0xa0] ss:$16 sps:$4 sm:$0xff]  }
 0x893   : > { %3983 = vmatpush1.bf16.msra.mxu0 %v5431_v17  ;;  %v5518_v17 = vld [vmem:[%s7089_s13 + $0xa8] ss:$16 sps:$4 sm:$0xff]  }
 0x894   : > { %4024 = vmatpush1.bf16.msra.mxu1 %v5434_v11  ;;  %3984 = vmatprep.subr.bf16.mxu0 %v5439_v39  ;;  %v5523_v11 = vld [vmem:[%s7089_s13 + $0xc4] ss:$16 sps:$4 sm:$0xff]   ;;  %v5526_v39 = vld [vmem:[%s7089_s13 + $0xcc] ss:$16 sps:$4 sm:$0xff]  }
 0x895   : > { %4025 = vmatprep.subr.bf16.mxu1 %v5442_v12  ;;  %v5521_v12 = vld [vmem:[%s7089_s13 + $0xc0] ss:$16 sps:$4 sm:$0xff]  }
 0x897   : > { %3985 = vmatpush1.bf16.msra.mxu0 %v5437_v16  ;;  %v5524_v16 = vld [vmem:[%s7089_s13 + $0xc8] ss:$16 sps:$4 sm:$0xff]  }
 0x898   : > { %4026 = vmatpush1.bf16.msra.mxu1 %v5440_v18  ;;  %3986 = vmatprep.subr.bf16.mxu0 %v5445_v15  ;;  %v5529_v18 = vld [vmem:[%s7089_s13 + $0xe4] ss:$16 sps:$4 sm:$0xff]   ;;  %v1002_v15 = vld [vmem:[%s7082_s6] sm:$0x1] }
 0x899   : > { %4027 = vmatprep.subr.bf16.mxu1 %v5448_v21  ;;  %v5532_v21 = vld [vmem:[%s7089_s13 + $0xec] ss:$16 sps:$4 sm:$0xff]  }
 0x89b   : > { %3987 = vmatpush1.bf16.msra.mxu0 %v5443_v22  ;;  %v5527_v22 = vld [vmem:[%s7089_s13 + $0xe0] ss:$16 sps:$4 sm:$0xff]  }
 0x89c   : > { %4028 = vmatpush1.bf16.msra.mxu1 %v5446_v23  ;;  %3988 = vmatprep.subr.bf16.mxu0 %v5451_v24  ;;  %v1047_v23 = vadd.f32 %v5938_v59, %v1002_v15  ;;  %v5530_v24 = vld [vmem:[%s7089_s13 + $0xe8] ss:$16 sps:$4 sm:$0xff]  }
 0x89d   : > { %4029 = vmatprep.subr.bf16.mxu1 %v5454_v25 }
 0x89e   : > { %v2613_v25 = vpack.c.bf16 %v1047_v23, %v1047_v23 }
 0x89f   : > { %3989 = vmatpush1.bf16.msra.mxu0 %v5449_v26 }
 0x8a0   : > { %4030 = vmatpush1.bf16.msra.mxu1 %v5452_v27  ;;  %3990 = vmatprep.subr.bf16.mxu0 %v5457_v28 }
 0x8a1   : > { %4031 = vmatprep.subr.bf16.mxu1 %v5460_v29 }
 0x8a3   : > { %3991 = vmatpush1.bf16.msra.mxu0 %v5455_v30 }
 0x8a4   : > { %4032 = vmatpush1.bf16.msra.mxu1 %v5458_v31  ;;  %3992 = vmatprep.subr.bf16.mxu0 %v5463_v32 }
 0x8a5   : > { %4033 = vmatprep.subr.bf16.mxu1 %v5466_v33 }
 0x8a7   : > { %3993 = vmatpush1.bf16.msra.mxu0 %v5461_v34 }
 0x8a8   : > { %4034 = vmatpush1.bf16.msra.mxu1 %v5464_v35  ;;  %3994 = vmatprep.subr.bf16.mxu0 %v5469_v54 }
 0x8a9   : > { %4035 = vmatprep.subr.bf16.mxu1 %v5472_v36 }
 0x8ab   : > { %3995 = vmatpush1.bf16.msra.mxu0 %v5467_v37 }
 0x8ac   : > { %4036 = vmatpush1.bf16.msra.mxu1 %v5470_v38  ;;  %3996 = vmatprep.subr.bf16.mxu0 %v5475_v40 }
 0x8ad   : > { %4037 = vmatprep.subr.bf16.mxu1 %v5478_v42 }
 0x8af   : > { %3997 = vmatpush1.bf16.msra.mxu0 %v5473_v43 }
 0x8b0   : > { %4038 = vmatpush1.bf16.msra.mxu1 %v5476_v44  ;;  %3998 = vmatprep.subr.bf16.mxu0 %v5481_v45 }
 0x8b1   : > { %4039 = vmatprep.subr.bf16.mxu1 %v5484_v46 }
 0x8b3   : > { %3999 = vmatpush1.bf16.msra.mxu0 %v5479_v47 }
 0x8b4   : > { %4040 = vmatpush1.bf16.msra.mxu1 %v5482_v20  ;;  %4210 = vmatprep.subr.bf16.mxu0 %v5487_v13 }
 0x8b5   : > { %4251 = vmatprep.subr.bf16.mxu1 %v5490_v48 }
 0x8b6   : > { %4001 = vmatmul.mubr.bf16.vlgmr.msra.gmra.mrb[60].mxu0 %v6565_v14  ;;  %v5502_v14 = vld [vmem:[%s7089_s13 + $0x4c] ss:$16 sps:$4 sm:$0xff]  }
 0x8b7   : > { %4042 = vmatmul.mubr.bf16.vlgmr.msra.gmra.mrb[32].mxu1 %v6763_v41  ;;  %4211 = vmatpush1.bf16.msra.mxu0 %v5485_v49  ;;  %v5497_v41 = vld [vmem:[%s7089_s13 + $0x40] ss:$16 sps:$4 sm:$0xff]  }
 0x8b8   : > { %4252 = vmatpush1.bf16.msra.mxu1 %v5488_v50  ;;  %4212 = vmatprep.subr.bf16.mxu0 %v5493_v51 }
 0x8b9   : > { %4253 = vmatprep.subr.bf16.mxu1 %v5496_v52  ;;  %4242 = vmatprep.mubr.bf16.mxu0 %v5552_v19 }
 0x8ba   : > { %4283 = vmatprep.mubr.bf16.mxu1 %v5552_v19  ;;  %v5508_v19 = vld [vmem:[%s7089_s13 + $0x6c] ss:$16 sps:$4 sm:$0xff]  }
 0x8bb   : > { %4213 = vmatpush1.bf16.msra.mxu0 %v5491_v56 }
 0x8bc   : > { %4254 = vmatpush1.bf16.msra.mxu1 %v5494_v57  ;;  %4214 = vmatprep.subr.bf16.mxu0 %v5499_v60 }
 0x8bd   : > { %4255 = vmatprep.subr.bf16.mxu1 %v5502_v14  ;;  %v4292_v14 = vld [vmem:[%s7091_s15] sm:$0xf] }
 0x8bf   : > { %4215 = vmatpush1.bf16.msra.mxu0 %v5497_v41  ;;  %v5554_v41 = vmov 1966171168  }
 0x8c0   : > { %4256 = vmatpush1.bf16.msra.mxu1 %v5500_v61  ;;  %4216 = vmatprep.subr.bf16.mxu0 %v5505_v63  ;;  %v4325_v61 = vunpack.c.l.s4 %v5554_v41  ;;  %v4297_v63 = vrot.slane %v4292_v14, %v5950_v2 }
 0x8c1   : > { %4257 = vmatprep.subr.bf16.mxu1 %v5508_v19 }
 0x8c3   : > { %4217 = vmatpush1.bf16.msra.mxu0 %v5503_v1  ;;  %v4305_v1 = vrot.slane %v4292_v14, %v2467_v53 }
 0x8c4   : > { %4258 = vmatpush1.bf16.msra.mxu1 %v5506_v3  ;;  %4218 = vmatprep.subr.bf16.mxu0 %v5511_v4  ;;  %v4301_v3 = vrot.slane %v4292_v14, %v5944_v0  ;;  %v4326_v4 = vunpack.c.0.s8 %v4325_v61 }
 0x8c5   : > { %4259 = vmatprep.subr.bf16.mxu1 %v5514_v5 }
 0x8c7   : > { %4219 = vmatpush1.bf16.msra.mxu0 %v5509_v6 }
 0x8c8   : > { %4260 = vmatpush1.bf16.msra.mxu1 %v5512_v7  ;;  %4220 = vmatprep.subr.bf16.mxu0 %v5517_v8  ;;  %v4309_v8 = vrot.slane %v4292_v14, %v2471_v55 }
 0x8c9   : > { %4261 = vmatprep.subr.bf16.mxu1 %v5520_v9 }
 0x8cb   : > { %4221 = vmatpush1.bf16.msra.mxu0 %v5515_v10 }
 0x8cc   : > { %4262 = vmatpush1.bf16.msra.mxu1 %v5518_v17  ;;  %4222 = vmatprep.subr.bf16.mxu0 %v5523_v11 }
 0x8cd   : > { %4263 = vmatprep.subr.bf16.mxu1 %v5526_v39 }
 0x8cf   : > { %4223 = vmatpush1.bf16.msra.mxu0 %v5521_v12 }
 0x8d0   : > { %4264 = vmatpush1.bf16.msra.mxu1 %v5524_v16  ;;  %4224 = vmatprep.subr.bf16.mxu0 %v5529_v18  ;;  %v4329_v18 = vsub.s32 %v4326_v4, %v5941_v62 }
 0x8d1   : > { %4265 = vmatprep.subr.bf16.mxu1 %v5532_v21 }
 0x8d3   : > { %4225 = vmatpush1.bf16.msra.mxu0 %v5527_v22 }
 0x8d4   : > { %4266 = vmatpush1.bf16.msra.mxu1 %v5530_v24 }
 0x8d6   : > { %4243 = vmatmul.mubr.bf16.vlgmr.msra.gmra.mrb[64].mxu0 %v2613_v25 }
 0x8d7   : > { %4284 = vmatmul.mubr.bf16.vlgmr.msra.gmra.mrb[36].mxu1 %v2613_v25 }
 0x909   : > { %v3838_v26 = vpop.f32.mrb[52].mxu0  ;;  %v3879_v27 = vpop.f32.mrb[24].mxu1 }
 0x90a   : > { %v3880_v28 = vadd.f32 %v3879_v27, %v3838_v26  ;;  %v3840_v29 = vpop.f32.mrb[53].mxu0  ;;  %v3881_v30 = vpop.f32.mrb[25].mxu1 }
 0x90b   : > { %v3882_v31 = vadd.f32 %v3881_v30, %v3840_v29  ;;  %v3842_v32 = vpop.f32.mrb[54].mxu0  ;;  %v3883_v59 = vpop.f32.mrb[26].mxu1 }
 0x90c   : > { %v3843_v33 = vpop.f32.mrb[55].mxu0  ;;  %v3884_v34 = vpop.f32.mrb[27].mxu1 }
 0x949   : > { %v3920_v35 = vpop.f32.mrb[56].mxu0  ;;  %v3961_v54 = vpop.f32.mrb[28].mxu1 }
 0x94a   : > { %v3921_v36 = vadd.f32 %v3920_v35, %v3880_v28  ;;  %v3922_v37 = vpop.f32.mrb[57].mxu0  ;;  %v3963_v38 = vpop.f32.mrb[29].mxu1 }
 0x94b   : > { %v3923_v40 = vadd.f32 %v3922_v37, %v3882_v31  ;;  %v3924_v42 = vpop.f32.mrb[58].mxu0  ;;  %v3965_v43 = vpop.f32.mrb[30].mxu1 }
 0x94c   : > { %v3925_v44 = vpop.f32.mrb[59].mxu0  ;;  %v3966_v45 = vpop.f32.mrb[31].mxu1 }
 0x989   : > { %v4002_v46 = vpop.f32.mrb[60].mxu0 }
 0x98a   : > { %v4003_v47 = vadd.f32 %v4002_v46, %v3961_v54  ;;  %v4043_v20 = vpop.f32.mrb[32].mxu1  ;;  %v4004_v13 = vpop.f32.mrb[61].mxu0 }
 0x98b   : > { %v4005_v48 = vadd.f32 %v4004_v13, %v3963_v38  ;;  %v4045_v49 = vpop.f32.mrb[33].mxu1  ;;  %v4006_v50 = vpop.f32.mrb[62].mxu0 }
 0x98c   : > { %v4044_v51 = vadd.f32 %v4043_v20, %v4003_v47  ;;  %v4047_v52 = vpop.f32.mrb[34].mxu1  ;;  %v4007_v56 = vpop.f32.mrb[63].mxu0 }
 0x98d   : > { %v4046_v57 = vadd.f32 %v4045_v49, %v4005_v48  ;;  %v4048_v60 = vpop.f32.mrb[35].mxu1 }
 0x9a9   : > { %v4244_v19 = vpop.f32.mrb[64].mxu0 }
 0x9aa   : > { %v4245_v5 = vadd.f32 %v4244_v19, %v3921_v36  ;;  %v4285_v6 = vpop.f32.mrb[36].mxu1  ;;  %v4246_v7 = vpop.f32.mrb[65].mxu0 }
 0x9ab   : > { %v4286_v9 = vadd.f32 %v4285_v6, %v4044_v51  ;;  %v4247_v10 = vadd.f32 %v4246_v7, %v3923_v40  ;;  %v4287_v17 = vpop.f32.mrb[37].mxu1  ;;  %v4248_v2 = vpop.f32.mrb[66].mxu0 }
 0x9ac   : > { %v4314_v11 = vadd.f32 %v4297_v63, %v4245_v5  ;;  %v4288_v39 = vadd.f32 %v4287_v17, %v4046_v57  ;;  %v4289_v12 = vpop.f32.mrb[38].mxu1  ;;  %v4249_v53 = vpop.f32.mrb[67].mxu0 }
 0x9ad   : > { %v4316_v16 = vadd.f32 %v4305_v1, %v4286_v9  ;;  %v4315_v0 = vadd.f32 %v4301_v3, %v4247_v10  ;;  %v4290_v15 = vpop.f32.mrb[39].mxu1 }
 0x9ae   : > { %v4317_v21 = vadd.f32 %v4309_v8, %v4288_v39 }
 0x9af   : > { %v4322_v22 = vcombine.low %v4314_v11, %v4315_v0 }
 0x9b0   : > { %v4323_v23 = vcombine.low %v4316_v16, %v4317_v21 }
 0x9b1   : > { %v4330_v24 = vrot.slane %v4322_v22, %v4329_v18 }
 0x9b2   : > { %v4337_v55 = vrot.slane %v4323_v23, %v4329_v18 }
 0x9b4   : > { %v4338_v25 = vcombine.low %v4330_v24, %v4337_v55 }
 0x9b6   : > { %v4345_v26 = vrot.slane %v4338_v25, %v4329_v18 }
 0x9b8   : > { %4351 = vst.msk [vmem:[%s543_s0] sm:$0xf] %vm4349_vm7, %v4345_v26 }
 0x9b9 PF: > { %s26_s21 = sadd.s32 1, %s5547_s21  }
 0x9ba   : > { %p23_p6 = scmp.ge.s32.totalorder %s26_s21, 4  }
 0x9bc   :  { %25 = sbr.rel (!%p23_p6) target bundleno = 2 (0x2), region = 117 }

</bundles_post_ra>
